<compile_context>
chip_gen: v7x
topology: tpu7x:2x2x1
jax: 0.10.0
libtpu: 0.0.40
codegen_flags: <defaults>
</compile_context>

<pallas_src>
import functools

import jax
import jax.numpy as jnp
import numpy as np
from jax import lax
from jax.experimental import pallas as pl
from jax.experimental.pallas import tpu as pltpu


def _round_up(x, m):
    return (x + m - 1) // m * m


def _pick_tm(B):
    if B <= 64:
        return _round_up(max(B, 8), 8)              # tiny batch: one grid step
    if B <= 1024:
        return _round_up(pl.cdiv(B, 2), 8)           # 2 steps -> both v7x TCs
    return 512                                       # large batch: big tiles


def _cross_attention_kernel(
    x_ref,        # (2, TM, Dp) f32 : [0]=x1 rows, [1]=x2 rows (lane-padded)
    fcw_ref,      # (Dp, Dp)   bf16 : fc weight, pre-transposed (in, out)
    wqkv_ref,     # (Dp, 3Dp)  bf16 : packed in_proj weight, pre-transposed
    wo_ref,       # (Dp, Dp)   bf16 : out_proj weight, pre-transposed
    qkvb_ref,     # (1, 3Dp)   f32  : packed in_proj bias
    vecs_ref,     # (4, Dp)    f32  : rows = fc.bias, out_proj.bias, ln.w, ln.b
    o_ref,        # (2, TM, Dp) f32 : output, [0]=x1 stream, [1]=x2 stream
    *, d_true,
):
    _, TM, Dp = x_ref.shape
    scale = 1.0 / float(np.sqrt(d_true))
    inv_d = 1.0 / float(d_true)
    bf16 = jnp.bfloat16

    vecs = vecs_ref[...]
    fcb, bo, lnw, lnb = vecs[0:1, :], vecs[1:2, :], vecs[2:3, :], vecs[3:4, :]

    # Two streams stacked on the sublane axis: rows [0:TM]=x1, [TM:2TM]=x2.
    # TM is a multiple of 8, so this reshape is layout-preserving (no copy).
    xs = x_ref[...].reshape(2 * TM, Dp)

    fcw = fcw_ref[...]                                  # bf16, reused twice
    # Shared fc: one bf16 MXU matmul for both streams, f32 accumulate.
    xl = jnp.dot(xs.astype(bf16), fcw, preferred_element_type=jnp.float32) + fcb

    # Fused q/k/v projection: one (2TM, Dp) x (Dp, 3Dp) bf16 matmul.
    qkv = (jnp.dot(xl.astype(bf16), wqkv_ref[...],
                   preferred_element_type=jnp.float32) + qkvb_ref[...])
    q = qkv[:, :Dp]              # 128-lane aligned slices -> free views
    k = qkv[:, Dp:2 * Dp]
    v = qkv[:, 2 * Dp:]

    # Partner tokens via a sublane roll (XLU slot), no slicing / concat.
    k_sw = pltpu.roll(k, TM, axis=0)
    v_sw = pltpu.roll(v, TM, axis=0)

    # 2x2 attention per batch row (padded lanes of q/k are zero -> no effect).
    s_self = jnp.sum(q * k, axis=-1, keepdims=True) * scale     # (2TM, 1)
    s_cross = jnp.sum(q * k_sw, axis=-1, keepdims=True) * scale

    m = jnp.maximum(s_self, s_cross)
    e_self = jnp.exp(s_self - m)
    e_cross = jnp.exp(s_cross - m)
    inv_z = 1.0 / (e_self + e_cross)        # exact reciprocal: accuracy for free
    ctx = (e_self * inv_z) * v + (e_cross * inv_z) * v_sw        # (2TM, Dp)

    # MHA out_proj, then fc + ReLU (stacked streams -> single bf16 matmuls).
    att = (jnp.dot(ctx.astype(bf16), wo_ref[...],
                   preferred_element_type=jnp.float32) + bo)
    y = jnp.maximum(
        jnp.dot(att.astype(bf16), fcw, preferred_element_type=jnp.float32) + fcb,
        0.0)

    # LayerNorm over the TRUE feature width (eps=1e-5, biased variance).
    # Padded lanes of y are exactly zero, so plain lane sums are already masked;
    # var = E[y^2] - mu^2 avoids needing a mask for the (y - mu) term.
    mu = jnp.sum(y, axis=-1, keepdims=True) * inv_d
    var = jnp.sum(y * y, axis=-1, keepdims=True) * inv_d - mu * mu
    yn = (y - mu) * lax.rsqrt(var + 1e-5) * lnw + lnb

    o_ref[...] = yn.reshape(2, TM, Dp)


@functools.partial(jax.jit,
                   static_argnames=("d_true", "tm", "single_buffer_weights"))
def _forward_impl(x, fcw_t, wqkv_t, wo_t, qkv_b, vecs, *,
                  d_true, tm, single_buffer_weights):
    _, Bp, Dp = x.shape
    grid = (Bp // tm,)

    def const_spec(shape):
        idx = lambda i, _s=shape: (0,) * len(_s)
        if single_buffer_weights:
            # Grid-invariant operands: one resident VMEM buffer, no pointless
            # double-buffering (halves the weight VMEM footprint).
            return pl.BlockSpec(shape, idx, pipeline_mode=pl.Buffered(1))
        return pl.BlockSpec(shape, idx)

    # Explicit VMEM budget: bf16 weights (single-buffered) + double-buffered
    # f32 activation tiles + in-kernel intermediates, 2x headroom, capped at
    # 64 MiB so the same plan is valid on v7x (and well under v5e/v6e 128 MiB).
    weight_bytes = (2 * Dp * Dp + Dp * 3 * Dp) * 2
    vec_bytes = 7 * Dp * 4
    act_bytes = 2 * 2 * (2 * tm * Dp) * 4
    interm_bytes = (2 * tm) * (9 * Dp) * 4
    vmem_limit = int(min(64 << 20,
                         max(32 << 20,
                             2 * (weight_bytes + vec_bytes + act_bytes
                                  + interm_bytes))))

    return pl.pallas_call(
        functools.partial(_cross_attention_kernel, d_true=d_true),
        out_shape=jax.ShapeDtypeStruct((2, Bp, Dp), jnp.float32),
        grid_spec=pltpu.PrefetchScalarGridSpec(
            num_scalar_prefetch=0,
            grid=grid,
            in_specs=[
                pl.BlockSpec((2, tm, Dp), lambda i: (0, i, 0)),   # stacked x1/x2
                const_spec((Dp, Dp)),                             # fc weight
                const_spec((Dp, 3 * Dp)),                         # packed qkv W
                const_spec((Dp, Dp)),                             # out_proj W
                const_spec((1, 3 * Dp)),                          # packed qkv b
                const_spec((4, Dp)),                              # bias/LN vecs
            ],
            out_specs=pl.BlockSpec((2, tm, Dp), lambda i: (0, i, 0)),
        ),
        compiler_params=pltpu.CompilerParams(
            dimension_semantics=("parallel",),
            vmem_limit_bytes=vmem_limit,
        ),
    )(x, fcw_t, wqkv_t, wo_t, qkv_b, vecs)


def cross_attention_forward(x1, x2, packed_params):
    """Returns (2, B, D): [0] = x1-token stream, [1] = x2-token stream."""
    fcw_t, wqkv_t, wo_t, qkv_b, vecs, D = packed_params
    Dp = fcw_t.shape[0]
    x1f = x1.reshape(x1.shape[0], -1)        # mirrors torch .view(B, -1)
    x2f = x2.reshape(x2.shape[0], -1)
    B = x1f.shape[0]

    TM = _pick_tm(B)
    Bp = _round_up(B, TM)

    # Pre-stack + lane/batch pad once in the wrapper (no in-kernel concat).
    x = jnp.zeros((2, Bp, Dp), jnp.float32)
    x = x.at[0, :B, :D].set(x1f)
    x = x.at[1, :B, :D].set(x2f)

    try:
        out = jax.block_until_ready(
            _forward_impl(x, fcw_t, wqkv_t, wo_t, qkv_b, vecs,
                          d_true=D, tm=TM, single_buffer_weights=True))
    except Exception:
        # Fallback if this jax/libtpu build rejects pipeline_mode=Buffered(1).
        out = jax.block_until_ready(
            _forward_impl(x, fcw_t, wqkv_t, wo_t, qkv_b, vecs,
                          d_true=D, tm=TM, single_buffer_weights=False))

    return out[:, :B, :D]


def make_params(key, D):
    """Deterministic synthetic parameters matching the PyTorch module shapes."""
    ks = jax.random.split(key, 8)
    s = 1.0 / np.sqrt(D)
    fcw = jax.random.uniform(ks[0], (D, D), jnp.float32, -s, s)      # fc.weight (out, in)
    fcb = jax.random.uniform(ks[1], (1, D), jnp.float32, -s, s)      # fc.bias
    in_proj_w = jax.random.uniform(ks[2], (3 * D, D), jnp.float32, -s, s)
    in_proj_b = jax.random.uniform(ks[3], (1, 3 * D), jnp.float32, -s, s)
    wo = jax.random.uniform(ks[4], (D, D), jnp.float32, -s, s)       # out_proj.weight
    bo = jax.random.uniform(ks[5], (1, D), jnp.float32, -s, s)       # out_proj.bias
    lnw = jnp.ones((1, D), jnp.float32)                              # layer_norm.weight
    lnb = jnp.zeros((1, D), jnp.float32)                             # layer_norm.bias

    wq, wk, wv = in_proj_w[:D], in_proj_w[D:2 * D], in_proj_w[2 * D:]
    bq, bk, bv = in_proj_b[:, :D], in_proj_b[:, D:2 * D], in_proj_b[:, 2 * D:]
    return (fcw, fcb, wq, bq, wk, bk, wv, bv, wo, bo, lnw, lnb)


def pack_params(params):
    """One-time packing: pad feature dim to 128 lanes, pre-transpose weights to
    (in, out), cast matmul weights to bf16, pack the small vectors."""
    (fcw, fcb, wq, bq, wk, bk, wv, bv, wo, bo, lnw, lnb) = params
    D = fcw.shape[0]
    Dp = _round_up(D, 128)

    def pad_w(w):                                   # (out, in) -> (Dp, Dp) (in, out) bf16
        wp = jnp.zeros((Dp, Dp), jnp.float32).at[:w.shape[0], :w.shape[1]].set(w)
        return wp.T.astype(jnp.bfloat16)

    def pad_v(v):                                   # (1, D) -> (1, Dp) f32, zero pad
        return jnp.zeros((1, Dp), jnp.float32).at[:, :v.shape[1]].set(v)

    fcw_t = pad_w(fcw)                                                # (Dp, Dp) bf16
    wqkv_t = jnp.concatenate([pad_w(wq), pad_w(wk), pad_w(wv)], axis=1)  # (Dp, 3Dp) bf16
    wo_t = pad_w(wo)                                                  # (Dp, Dp) bf16
    qkv_b = jnp.concatenate([pad_v(bq), pad_v(bk), pad_v(bv)], axis=1)   # (1, 3Dp) f32
    vecs = jnp.concatenate([pad_v(fcb), pad_v(bo), pad_v(lnw), pad_v(lnb)], axis=0)  # (4, Dp)
    return (fcw_t, wqkv_t, wo_t, qkv_b, vecs, D)


def reference_forward(x1, x2, params):
    """Pure-JAX reference mirroring the kernel numerics (bf16 matmul operands,
    f32 accumulate, f32 softmax / LayerNorm)."""
    (fcw, fcb, wq, bq, wk, bk, wv, bv, wo, bo, lnw, lnb) = params
    D = x1.shape[-1]
    scale = 1.0 / float(np.sqrt(D))
    bf16 = jnp.bfloat16

    def mm(a, w_out_in):
        return jnp.dot(a.astype(bf16), w_out_in.T.astype(bf16),
                       preferred_element_type=jnp.float32)

    x1l = mm(x1, fcw) + fcb
    x2l = mm(x2, fcw) + fcb
    toks = jnp.stack([x1l, x2l], axis=1)                  # (B, 2, D)

    q = mm(toks, wq) + bq
    k = mm(toks, wk) + bk
    v = mm(toks, wv) + bv
    s = jnp.einsum("bqd,bkd->bqk", q, k) * scale
    a = jax.nn.softmax(s, axis=-1)
    ctx = jnp.einsum("bqk,bkd->bqd", a, v)
    att = mm(ctx, wo) + bo

    y = jnp.maximum(mm(att, fcw) + fcb, 0.0)
    mu = jnp.mean(y, axis=-1, keepdims=True)
    var = jnp.mean((y - mu) ** 2, axis=-1, keepdims=True)
    out = (y - mu) / jnp.sqrt(var + 1e-5) * lnw + lnb     # (B, 2, D)
    return jnp.transpose(out, (1, 0, 2))                  # (2, B, D)


if __name__ == "__main__":
    B, D = 8, 32                       # batch=8, input_size (hidden) = 32
    key = jax.random.PRNGKey(0)
    kx1, kx2, kp = jax.random.split(key, 3)

    x1 = jax.random.normal(kx1, (B, D), jnp.float32)
    x2 = jax.random.normal(kx2, (B, D), jnp.float32)
    params = make_params(kp, D)
    packed = pack_params(params)

    out = cross_attention_forward(x1, x2, packed)
    out = jax.block_until_ready(out)

    ref = reference_forward(x1, x2, params)
    # Kernel and reference apply identical bf16 quantization to matmul operands;
    # the small tolerance covers accumulation-order / rounding-path differences.
    np.testing.assert_allclose(np.asarray(out), np.asarray(ref),
                               rtol=5e-3, atol=5e-3)

    print("KERNEL_OK")
</pallas_src>

<mosaic_0001>
module attributes {stable_mosaic.version = 11 : i64} {
  func.func @_cross_attention_kernel(%arg0: i32, %arg1: memref<2x8x128xf32, #tpu.memory_space<vmem>>, %arg2: memref<128x128xbf16, #tpu.memory_space<vmem>>, %arg3: memref<128x384xbf16, #tpu.memory_space<vmem>>, %arg4: memref<128x128xbf16, #tpu.memory_space<vmem>>, %arg5: memref<1x384xf32, #tpu.memory_space<vmem>>, %arg6: memref<4x128xf32, #tpu.memory_space<vmem>>, %arg7: memref<2x8x128xf32, #tpu.memory_space<vmem>>) attributes {dimension_semantics = [#tpu.dimension_semantics<parallel>], iteration_bounds = array<i64: 1>, scalar_prefetch = 0 : i64, scratch_operands = 0 : i64, tpu.core_type = #tpu.core_type<tc>, window_params = [{transform_indices = @transform_0, window_bounds = array<i64: 2, 8, 128>}, {pipeline_mode = #tpu.pipeline_mode<synchronous>, transform_indices = @transform_1, window_bounds = array<i64: 128, 128>}, {pipeline_mode = #tpu.pipeline_mode<synchronous>, transform_indices = @transform_2, window_bounds = array<i64: 128, 384>}, {pipeline_mode = #tpu.pipeline_mode<synchronous>, transform_indices = @transform_3, window_bounds = array<i64: 128, 128>}, {pipeline_mode = #tpu.pipeline_mode<synchronous>, transform_indices = @transform_4, window_bounds = array<i64: 1, 384>}, {pipeline_mode = #tpu.pipeline_mode<synchronous>, transform_indices = @transform_5, window_bounds = array<i64: 4, 128>}, {transform_indices = @transform_6, window_bounds = array<i64: 2, 8, 128>}]} {
    %c0 = arith.constant 0 : index
    %c0_0 = arith.constant 0 : index
    %0 = vector.load %arg6[%c0, %c0_0] : memref<4x128xf32, #tpu.memory_space<vmem>>, vector<4x128xf32>
    %1 = vector.extract_strided_slice %0 {offsets = [0, 0], sizes = [1, 128], strides = [1, 1]} : vector<4x128xf32> to vector<1x128xf32>
    %2 = vector.extract_strided_slice %0 {offsets = [1, 0], sizes = [1, 128], strides = [1, 1]} : vector<4x128xf32> to vector<1x128xf32>
    %3 = vector.extract_strided_slice %0 {offsets = [2, 0], sizes = [1, 128], strides = [1, 1]} : vector<4x128xf32> to vector<1x128xf32>
    %4 = vector.extract_strided_slice %0 {offsets = [3, 0], sizes = [1, 128], strides = [1, 1]} : vector<4x128xf32> to vector<1x128xf32>
    %c0_1 = arith.constant 0 : index
    %c0_2 = arith.constant 0 : index
    %c0_3 = arith.constant 0 : index
    %5 = vector.load %arg1[%c0_1, %c0_2, %c0_3] : memref<2x8x128xf32, #tpu.memory_space<vmem>>, vector<2x8x128xf32>
    %6 = vector.shape_cast %5 : vector<2x8x128xf32> to vector<16x128xf32>
    %c0_4 = arith.constant 0 : index
    %c0_5 = arith.constant 0 : index
    %7 = vector.load %arg2[%c0_4, %c0_5] : memref<128x128xbf16, #tpu.memory_space<vmem>>, vector<128x128xbf16>
    %8 = arith.truncf %6 : vector<16x128xf32> to vector<16x128xbf16>
    %cst = arith.constant dense<0.000000e+00> : vector<16x128xf32>
    %9 = tpu.matmul %8, %7, %cst {dimension_numbers = #tpu.dot_dimension_numbers<[1], [0], [0], [1], [0, 0, 1, 1], [], []>} : vector<16x128xbf16>, vector<128x128xbf16>, vector<16x128xf32> -> vector<16x128xf32>
    %10 = vector.broadcast %1 : vector<1x128xf32> to vector<16x128xf32>
    %11 = arith.addf %9, %10 : vector<16x128xf32>
    %12 = arith.truncf %11 : vector<16x128xf32> to vector<16x128xbf16>
    %c0_6 = arith.constant 0 : index
    %c0_7 = arith.constant 0 : index
    %13 = vector.load %arg3[%c0_6, %c0_7] : memref<128x384xbf16, #tpu.memory_space<vmem>>, vector<128x384xbf16>
    %cst_8 = arith.constant dense<0.000000e+00> : vector<16x384xf32>
    %14 = tpu.matmul %12, %13, %cst_8 {dimension_numbers = #tpu.dot_dimension_numbers<[1], [0], [0], [1], [0, 0, 1, 1], [], []>} : vector<16x128xbf16>, vector<128x384xbf16>, vector<16x384xf32> -> vector<16x384xf32>
    %c0_9 = arith.constant 0 : index
    %c0_10 = arith.constant 0 : index
    %15 = vector.load %arg5[%c0_9, %c0_10] : memref<1x384xf32, #tpu.memory_space<vmem>>, vector<1x384xf32>
    %16 = vector.broadcast %15 : vector<1x384xf32> to vector<16x384xf32>
    %17 = arith.addf %14, %16 : vector<16x384xf32>
    %18 = vector.extract_strided_slice %17 {offsets = [0, 0], sizes = [16, 128], strides = [1, 1]} : vector<16x384xf32> to vector<16x128xf32>
    %19 = vector.extract_strided_slice %17 {offsets = [0, 128], sizes = [16, 128], strides = [1, 1]} : vector<16x384xf32> to vector<16x128xf32>
    %20 = vector.extract_strided_slice %17 {offsets = [0, 256], sizes = [16, 128], strides = [1, 1]} : vector<16x384xf32> to vector<16x128xf32>
    %c8_i32 = arith.constant 8 : i32
    %21 = tpu.dynamic_rotate %19 by %c8_i32 dim 0 : vector<16x128xf32>, i32 -> vector<16x128xf32>
    %c8_i32_11 = arith.constant 8 : i32
    %22 = tpu.dynamic_rotate %20 by %c8_i32_11 dim 0 : vector<16x128xf32>, i32 -> vector<16x128xf32>
    %23 = arith.mulf %18, %19 : vector<16x128xf32>
    %cst_12 = arith.constant dense<0.000000e+00> : vector<16xf32>
    %24 = vector.multi_reduction <add>, %23, %cst_12 [1] : vector<16x128xf32> to vector<16xf32>
    %25 = vector.shape_cast %24 : vector<16xf32> to vector<16x1xf32>
    %cst_13 = arith.constant 0.176776692 : f32
    %26 = vector.broadcast %cst_13 : f32 to vector<16x1xf32>
    %27 = arith.mulf %25, %26 : vector<16x1xf32>
    %28 = arith.mulf %18, %21 : vector<16x128xf32>
    %cst_14 = arith.constant dense<0.000000e+00> : vector<16xf32>
    %29 = vector.multi_reduction <add>, %28, %cst_14 [1] : vector<16x128xf32> to vector<16xf32>
    %30 = vector.shape_cast %29 : vector<16xf32> to vector<16x1xf32>
    %cst_15 = arith.constant 0.176776692 : f32
    %31 = vector.broadcast %cst_15 : f32 to vector<16x1xf32>
    %32 = arith.mulf %30, %31 : vector<16x1xf32>
    %33 = arith.maximumf %27, %32 : vector<16x1xf32>
    %34 = arith.subf %27, %33 : vector<16x1xf32>
    %35 = math.exp %34 : vector<16x1xf32>
    %36 = arith.subf %32, %33 : vector<16x1xf32>
    %37 = math.exp %36 : vector<16x1xf32>
    %38 = arith.addf %35, %37 : vector<16x1xf32>
    %cst_16 = arith.constant 1.000000e+00 : f32
    %39 = vector.broadcast %cst_16 : f32 to vector<16x1xf32>
    %40 = arith.divf %39, %38 : vector<16x1xf32>
    %41 = arith.mulf %35, %40 : vector<16x1xf32>
    %42 = vector.broadcast %41 : vector<16x1xf32> to vector<16x128xf32>
    %43 = arith.mulf %42, %20 : vector<16x128xf32>
    %44 = arith.mulf %37, %40 : vector<16x1xf32>
    %45 = vector.broadcast %44 : vector<16x1xf32> to vector<16x128xf32>
    %46 = arith.mulf %45, %22 : vector<16x128xf32>
    %47 = arith.addf %43, %46 : vector<16x128xf32>
    %48 = arith.truncf %47 : vector<16x128xf32> to vector<16x128xbf16>
    %c0_17 = arith.constant 0 : index
    %c0_18 = arith.constant 0 : index
    %49 = vector.load %arg4[%c0_17, %c0_18] : memref<128x128xbf16, #tpu.memory_space<vmem>>, vector<128x128xbf16>
    %cst_19 = arith.constant dense<0.000000e+00> : vector<16x128xf32>
    %50 = tpu.matmul %48, %49, %cst_19 {dimension_numbers = #tpu.dot_dimension_numbers<[1], [0], [0], [1], [0, 0, 1, 1], [], []>} : vector<16x128xbf16>, vector<128x128xbf16>, vector<16x128xf32> -> vector<16x128xf32>
    %51 = vector.broadcast %2 : vector<1x128xf32> to vector<16x128xf32>
    %52 = arith.addf %50, %51 : vector<16x128xf32>
    %53 = arith.truncf %52 : vector<16x128xf32> to vector<16x128xbf16>
    %cst_20 = arith.constant dense<0.000000e+00> : vector<16x128xf32>
    %54 = tpu.matmul %53, %7, %cst_20 {dimension_numbers = #tpu.dot_dimension_numbers<[1], [0], [0], [1], [0, 0, 1, 1], [], []>} : vector<16x128xbf16>, vector<128x128xbf16>, vector<16x128xf32> -> vector<16x128xf32>
    %55 = vector.broadcast %1 : vector<1x128xf32> to vector<16x128xf32>
    %56 = arith.addf %54, %55 : vector<16x128xf32>
    %cst_21 = arith.constant 0.000000e+00 : f32
    %57 = vector.broadcast %cst_21 : f32 to vector<16x128xf32>
    %58 = arith.maximumf %56, %57 : vector<16x128xf32>
    %cst_22 = arith.constant dense<0.000000e+00> : vector<16xf32>
    %59 = vector.multi_reduction <add>, %58, %cst_22 [1] : vector<16x128xf32> to vector<16xf32>
    %60 = vector.shape_cast %59 : vector<16xf32> to vector<16x1xf32>
    %cst_23 = arith.constant 3.125000e-02 : f32
    %61 = vector.broadcast %cst_23 : f32 to vector<16x1xf32>
    %62 = arith.mulf %60, %61 : vector<16x1xf32>
    %63 = arith.mulf %58, %58 : vector<16x128xf32>
    %cst_24 = arith.constant dense<0.000000e+00> : vector<16xf32>
    %64 = vector.multi_reduction <add>, %63, %cst_24 [1] : vector<16x128xf32> to vector<16xf32>
    %65 = vector.shape_cast %64 : vector<16xf32> to vector<16x1xf32>
    %cst_25 = arith.constant 3.125000e-02 : f32
    %66 = vector.broadcast %cst_25 : f32 to vector<16x1xf32>
    %67 = arith.mulf %65, %66 : vector<16x1xf32>
    %68 = arith.mulf %62, %62 : vector<16x1xf32>
    %69 = arith.subf %67, %68 : vector<16x1xf32>
    %70 = vector.broadcast %62 : vector<16x1xf32> to vector<16x128xf32>
    %71 = arith.subf %58, %70 : vector<16x128xf32>
    %cst_26 = arith.constant 9.99999974E-6 : f32
    %72 = vector.broadcast %cst_26 : f32 to vector<16x1xf32>
    %73 = arith.addf %69, %72 : vector<16x1xf32>
    %74 = math.rsqrt %73 : vector<16x1xf32>
    %75 = vector.broadcast %74 : vector<16x1xf32> to vector<16x128xf32>
    %76 = arith.mulf %71, %75 : vector<16x128xf32>
    %77 = vector.broadcast %3 : vector<1x128xf32> to vector<16x128xf32>
    %78 = arith.mulf %76, %77 : vector<16x128xf32>
    %79 = vector.broadcast %4 : vector<1x128xf32> to vector<16x128xf32>
    %80 = arith.addf %78, %79 : vector<16x128xf32>
    %81 = vector.shape_cast %80 : vector<16x128xf32> to vector<2x8x128xf32>
    %c0_27 = arith.constant 0 : index
    %c0_28 = arith.constant 0 : index
    %c0_29 = arith.constant 0 : index
    %82 = vector.load %arg7[%c0_27, %c0_28, %c0_29] : memref<2x8x128xf32, #tpu.memory_space<vmem>>, vector<2x8x128xf32>
    tpu.vector_store %arg7[%c0_27, %c0_28, %c0_29], %81 {strides = array<i32>} : memref<2x8x128xf32, #tpu.memory_space<vmem>>, vector<2x8x128xf32>,
    return
  }
  func.func @transform_0(%arg0: i32) -> (i32, i32, i32) {
    %c0_i32 = arith.constant 0 : i32
    %c0_i32_0 = arith.constant 0 : i32
    %c0_i32_1 = arith.constant 0 : i32
    return %c0_i32, %arg0, %c0_i32_0 : i32, i32, i32
  }
  func.func @transform_1(%arg0: i32) -> (i32, i32) {
    %c0_i32 = arith.constant 0 : i32
    %c0_i32_0 = arith.constant 0 : i32
    %c0_i32_1 = arith.constant 0 : i32
    return %c0_i32, %c0_i32_0 : i32, i32
  }
  func.func @transform_2(%arg0: i32) -> (i32, i32) {
    %c0_i32 = arith.constant 0 : i32
    %c0_i32_0 = arith.constant 0 : i32
    %c0_i32_1 = arith.constant 0 : i32
    return %c0_i32, %c0_i32_0 : i32, i32
  }
  func.func @transform_3(%arg0: i32) -> (i32, i32) {
    %c0_i32 = arith.constant 0 : i32
    %c0_i32_0 = arith.constant 0 : i32
    %c0_i32_1 = arith.constant 0 : i32
    return %c0_i32, %c0_i32_0 : i32, i32
  }
  func.func @transform_4(%arg0: i32) -> (i32, i32) {
    %c0_i32 = arith.constant 0 : i32
    %c0_i32_0 = arith.constant 0 : i32
    %c0_i32_1 = arith.constant 0 : i32
    return %c0_i32, %c0_i32_0 : i32, i32
  }
  func.func @transform_5(%arg0: i32) -> (i32, i32) {
    %c0_i32 = arith.constant 0 : i32
    %c0_i32_0 = arith.constant 0 : i32
    %c0_i32_1 = arith.constant 0 : i32
    return %c0_i32, %c0_i32_0 : i32, i32
  }
  func.func @transform_6(%arg0: i32) -> (i32, i32, i32) {
    %c0_i32 = arith.constant 0 : i32
    %c0_i32_0 = arith.constant 0 : i32
    %c0_i32_1 = arith.constant 0 : i32
    return %c0_i32, %arg0, %c0_i32_0 : i32, i32, i32
  }
}

module attributes {stable_mosaic.version = 11 : i64} {
  func.func @_cross_attention_kernel(%arg0: i32, %arg1: memref<2x8x128xf32, #tpu.memory_space<vmem>>, %arg2: memref<128x128xbf16, #tpu.memory_space<vmem>>, %arg3: memref<128x384xbf16, #tpu.memory_space<vmem>>, %arg4: memref<128x128xbf16, #tpu.memory_space<vmem>>, %arg5: memref<1x384xf32, #tpu.memory_space<vmem>>, %arg6: memref<4x128xf32, #tpu.memory_space<vmem>>, %arg7: memref<2x8x128xf32, #tpu.memory_space<vmem>>) attributes {dimension_semantics = [#tpu.dimension_semantics<parallel>], iteration_bounds = array<i64: 1>, scalar_prefetch = 0 : i64, scratch_operands = 0 : i64, tpu.core_type = #tpu.core_type<tc>, window_params = [{transform_indices = @transform_0, window_bounds = array<i64: 2, 8, 128>}, {pipeline_mode = #tpu.pipeline_mode<synchronous>, transform_indices = @transform_1, window_bounds = array<i64: 128, 128>}, {pipeline_mode = #tpu.pipeline_mode<synchronous>, transform_indices = @transform_2, window_bounds = array<i64: 128, 384>}, {pipeline_mode = #tpu.pipeline_mode<synchronous>, transform_indices = @transform_3, window_bounds = array<i64: 128, 128>}, {pipeline_mode = #tpu.pipeline_mode<synchronous>, transform_indices = @transform_4, window_bounds = array<i64: 1, 384>}, {pipeline_mode = #tpu.pipeline_mode<synchronous>, transform_indices = @transform_5, window_bounds = array<i64: 4, 128>}, {transform_indices = @transform_6, window_bounds = array<i64: 2, 8, 128>}]} {
    %c0 = arith.constant 0 : index
    %c0_0 = arith.constant 0 : index
    %0 = vector.load %arg6[%c0, %c0_0] : memref<4x128xf32, #tpu.memory_space<vmem>>, vector<4x128xf32>
    %1 = vector.extract_strided_slice %0 {offsets = [0, 0], sizes = [1, 128], strides = [1, 1]} : vector<4x128xf32> to vector<1x128xf32>
    %2 = vector.extract_strided_slice %0 {offsets = [1, 0], sizes = [1, 128], strides = [1, 1]} : vector<4x128xf32> to vector<1x128xf32>
    %3 = vector.extract_strided_slice %0 {offsets = [2, 0], sizes = [1, 128], strides = [1, 1]} : vector<4x128xf32> to vector<1x128xf32>
    %4 = vector.extract_strided_slice %0 {offsets = [3, 0], sizes = [1, 128], strides = [1, 1]} : vector<4x128xf32> to vector<1x128xf32>
    %c0_1 = arith.constant 0 : index
    %c0_2 = arith.constant 0 : index
    %c0_3 = arith.constant 0 : index
    %5 = vector.load %arg1[%c0_1, %c0_2, %c0_3] : memref<2x8x128xf32, #tpu.memory_space<vmem>>, vector<2x8x128xf32>
    %6 = vector.shape_cast %5 : vector<2x8x128xf32> to vector<16x128xf32>
    %c0_4 = arith.constant 0 : index
    %c0_5 = arith.constant 0 : index
    %7 = vector.load %arg2[%c0_4, %c0_5] : memref<128x128xbf16, #tpu.memory_space<vmem>>, vector<128x128xbf16>
    %8 = arith.truncf %6 : vector<16x128xf32> to vector<16x128xbf16>
    %cst = arith.constant dense<0.000000e+00> : vector<16x128xf32>
    %9 = tpu.matmul %8, %7, %cst {dimension_numbers = #tpu.dot_dimension_numbers<[1], [0], [0], [1], [0, 0, 1, 1], [], []>} : vector<16x128xbf16>, vector<128x128xbf16>, vector<16x128xf32> -> vector<16x128xf32>
    %10 = vector.broadcast %1 : vector<1x128xf32> to vector<16x128xf32>
    %11 = arith.addf %9, %10 : vector<16x128xf32>
    %12 = arith.truncf %11 : vector<16x128xf32> to vector<16x128xbf16>
    %c0_6 = arith.constant 0 : index
    %c0_7 = arith.constant 0 : index
    %13 = vector.load %arg3[%c0_6, %c0_7] : memref<128x384xbf16, #tpu.memory_space<vmem>>, vector<128x384xbf16>
    %cst_8 = arith.constant dense<0.000000e+00> : vector<16x384xf32>
    %14 = tpu.matmul %12, %13, %cst_8 {dimension_numbers = #tpu.dot_dimension_numbers<[1], [0], [0], [1], [0, 0, 1, 1], [], []>} : vector<16x128xbf16>, vector<128x384xbf16>, vector<16x384xf32> -> vector<16x384xf32>
    %c0_9 = arith.constant 0 : index
    %c0_10 = arith.constant 0 : index
    %15 = vector.load %arg5[%c0_9, %c0_10] : memref<1x384xf32, #tpu.memory_space<vmem>>, vector<1x384xf32>
    %16 = vector.broadcast %15 : vector<1x384xf32> to vector<16x384xf32>
    %17 = arith.addf %14, %16 : vector<16x384xf32>
    %18 = vector.extract_strided_slice %17 {offsets = [0, 0], sizes = [16, 128], strides = [1, 1]} : vector<16x384xf32> to vector<16x128xf32>
    %19 = vector.extract_strided_slice %17 {offsets = [0, 128], sizes = [16, 128], strides = [1, 1]} : vector<16x384xf32> to vector<16x128xf32>
    %20 = vector.extract_strided_slice %17 {offsets = [0, 256], sizes = [16, 128], strides = [1, 1]} : vector<16x384xf32> to vector<16x128xf32>
    %c8_i32 = arith.constant 8 : i32
    %21 = tpu.dynamic_rotate %19 by %c8_i32 dim 0 : vector<16x128xf32>, i32 -> vector<16x128xf32>
    %c8_i32_11 = arith.constant 8 : i32
    %22 = tpu.dynamic_rotate %20 by %c8_i32_11 dim 0 : vector<16x128xf32>, i32 -> vector<16x128xf32>
    %23 = arith.mulf %18, %19 : vector<16x128xf32>
    %cst_12 = arith.constant dense<0.000000e+00> : vector<16xf32>
    %24 = vector.multi_reduction <add>, %23, %cst_12 [1] : vector<16x128xf32> to vector<16xf32>
    %25 = vector.shape_cast %24 : vector<16xf32> to vector<16x1xf32>
    %cst_13 = arith.constant 0.176776692 : f32
    %26 = vector.broadcast %cst_13 : f32 to vector<16x1xf32>
    %27 = arith.mulf %25, %26 : vector<16x1xf32>
    %28 = arith.mulf %18, %21 : vector<16x128xf32>
    %cst_14 = arith.constant dense<0.000000e+00> : vector<16xf32>
    %29 = vector.multi_reduction <add>, %28, %cst_14 [1] : vector<16x128xf32> to vector<16xf32>
    %30 = vector.shape_cast %29 : vector<16xf32> to vector<16x1xf32>
    %cst_15 = arith.constant 0.176776692 : f32
    %31 = vector.broadcast %cst_15 : f32 to vector<16x1xf32>
    %32 = arith.mulf %30, %31 : vector<16x1xf32>
    %33 = arith.maximumf %27, %32 : vector<16x1xf32>
    %34 = arith.subf %27, %33 : vector<16x1xf32>
    %35 = math.exp %34 : vector<16x1xf32>
    %36 = arith.subf %32, %33 : vector<16x1xf32>
    %37 = math.exp %36 : vector<16x1xf32>
    %38 = arith.addf %35, %37 : vector<16x1xf32>
    %cst_16 = arith.constant 1.000000e+00 : f32
    %39 = vector.broadcast %cst_16 : f32 to vector<16x1xf32>
    %40 = arith.divf %39, %38 : vector<16x1xf32>
    %41 = arith.mulf %35, %40 : vector<16x1xf32>
    %42 = vector.broadcast %41 : vector<16x1xf32> to vector<16x128xf32>
    %43 = arith.mulf %42, %20 : vector<16x128xf32>
    %44 = arith.mulf %37, %40 : vector<16x1xf32>
    %45 = vector.broadcast %44 : vector<16x1xf32> to vector<16x128xf32>
    %46 = arith.mulf %45, %22 : vector<16x128xf32>
    %47 = arith.addf %43, %46 : vector<16x128xf32>
    %48 = arith.truncf %47 : vector<16x128xf32> to vector<16x128xbf16>
    %c0_17 = arith.constant 0 : index
    %c0_18 = arith.constant 0 : index
    %49 = vector.load %arg4[%c0_17, %c0_18] : memref<128x128xbf16, #tpu.memory_space<vmem>>, vector<128x128xbf16>
    %cst_19 = arith.constant dense<0.000000e+00> : vector<16x128xf32>
    %50 = tpu.matmul %48, %49, %cst_19 {dimension_numbers = #tpu.dot_dimension_numbers<[1], [0], [0], [1], [0, 0, 1, 1], [], []>} : vector<16x128xbf16>, vector<128x128xbf16>, vector<16x128xf32> -> vector<16x128xf32>
    %51 = vector.broadcast %2 : vector<1x128xf32> to vector<16x128xf32>
    %52 = arith.addf %50, %51 : vector<16x128xf32>
    %53 = arith.truncf %52 : vector<16x128xf32> to vector<16x128xbf16>
    %cst_20 = arith.constant dense<0.000000e+00> : vector<16x128xf32>
    %54 = tpu.matmul %53, %7, %cst_20 {dimension_numbers = #tpu.dot_dimension_numbers<[1], [0], [0], [1], [0, 0, 1, 1], [], []>} : vector<16x128xbf16>, vector<128x128xbf16>, vector<16x128xf32> -> vector<16x128xf32>
    %55 = vector.broadcast %1 : vector<1x128xf32> to vector<16x128xf32>
    %56 = arith.addf %54, %55 : vector<16x128xf32>
    %cst_21 = arith.constant 0.000000e+00 : f32
    %57 = vector.broadcast %cst_21 : f32 to vector<16x128xf32>
    %58 = arith.maximumf %56, %57 : vector<16x128xf32>
    %cst_22 = arith.constant dense<0.000000e+00> : vector<16xf32>
    %59 = vector.multi_reduction <add>, %58, %cst_22 [1] : vector<16x128xf32> to vector<16xf32>
    %60 = vector.shape_cast %59 : vector<16xf32> to vector<16x1xf32>
    %cst_23 = arith.constant 3.125000e-02 : f32
    %61 = vector.broadcast %cst_23 : f32 to vector<16x1xf32>
    %62 = arith.mulf %60, %61 : vector<16x1xf32>
    %63 = arith.mulf %58, %58 : vector<16x128xf32>
    %cst_24 = arith.constant dense<0.000000e+00> : vector<16xf32>
    %64 = vector.multi_reduction <add>, %63, %cst_24 [1] : vector<16x128xf32> to vector<16xf32>
    %65 = vector.shape_cast %64 : vector<16xf32> to vector<16x1xf32>
    %cst_25 = arith.constant 3.125000e-02 : f32
    %66 = vector.broadcast %cst_25 : f32 to vector<16x1xf32>
    %67 = arith.mulf %65, %66 : vector<16x1xf32>
    %68 = arith.mulf %62, %62 : vector<16x1xf32>
    %69 = arith.subf %67, %68 : vector<16x1xf32>
    %70 = vector.broadcast %62 : vector<16x1xf32> to vector<16x128xf32>
    %71 = arith.subf %58, %70 : vector<16x128xf32>
    %cst_26 = arith.constant 9.99999974E-6 : f32
    %72 = vector.broadcast %cst_26 : f32 to vector<16x1xf32>
    %73 = arith.addf %69, %72 : vector<16x1xf32>
    %74 = math.rsqrt %73 : vector<16x1xf32>
    %75 = vector.broadcast %74 : vector<16x1xf32> to vector<16x128xf32>
    %76 = arith.mulf %71, %75 : vector<16x128xf32>
    %77 = vector.broadcast %3 : vector<1x128xf32> to vector<16x128xf32>
    %78 = arith.mulf %76, %77 : vector<16x128xf32>
    %79 = vector.broadcast %4 : vector<1x128xf32> to vector<16x128xf32>
    %80 = arith.addf %78, %79 : vector<16x128xf32>
    %81 = vector.shape_cast %80 : vector<16x128xf32> to vector<2x8x128xf32>
    %c0_27 = arith.constant 0 : index
    %c0_28 = arith.constant 0 : index
    %c0_29 = arith.constant 0 : index
    %82 = vector.load %arg7[%c0_27, %c0_28, %c0_29] : memref<2x8x128xf32, #tpu.memory_space<vmem>>, vector<2x8x128xf32>
    tpu.vector_store %arg7[%c0_27, %c0_28, %c0_29], %81 {strides = array<i32>} : memref<2x8x128xf32, #tpu.memory_space<vmem>>, vector<2x8x128xf32>,
    return
  }
  func.func @transform_0(%arg0: i32) -> (i32, i32, i32) {
    %c0_i32 = arith.constant 0 : i32
    %c0_i32_0 = arith.constant 0 : i32
    %c0_i32_1 = arith.constant 0 : i32
    return %c0_i32, %arg0, %c0_i32_0 : i32, i32, i32
  }
  func.func @transform_1(%arg0: i32) -> (i32, i32) {
    %c0_i32 = arith.constant 0 : i32
    %c0_i32_0 = arith.constant 0 : i32
    %c0_i32_1 = arith.constant 0 : i32
    return %c0_i32, %c0_i32_0 : i32, i32
  }
  func.func @transform_2(%arg0: i32) -> (i32, i32) {
    %c0_i32 = arith.constant 0 : i32
    %c0_i32_0 = arith.constant 0 : i32
    %c0_i32_1 = arith.constant 0 : i32
    return %c0_i32, %c0_i32_0 : i32, i32
  }
  func.func @transform_3(%arg0: i32) -> (i32, i32) {
    %c0_i32 = arith.constant 0 : i32
    %c0_i32_0 = arith.constant 0 : i32
    %c0_i32_1 = arith.constant 0 : i32
    return %c0_i32, %c0_i32_0 : i32, i32
  }
  func.func @transform_4(%arg0: i32) -> (i32, i32) {
    %c0_i32 = arith.constant 0 : i32
    %c0_i32_0 = arith.constant 0 : i32
    %c0_i32_1 = arith.constant 0 : i32
    return %c0_i32, %c0_i32_0 : i32, i32
  }
  func.func @transform_5(%arg0: i32) -> (i32, i32) {
    %c0_i32 = arith.constant 0 : i32
    %c0_i32_0 = arith.constant 0 : i32
    %c0_i32_1 = arith.constant 0 : i32
    return %c0_i32, %c0_i32_0 : i32, i32
  }
  func.func @transform_6(%arg0: i32) -> (i32, i32, i32) {
    %c0_i32 = arith.constant 0 : i32
    %c0_i32_0 = arith.constant 0 : i32
    %c0_i32_1 = arith.constant 0 : i32
    return %c0_i32, %arg0, %c0_i32_0 : i32, i32, i32
  }
}

</mosaic_0001>

<bundles_post_ra>
// kernel: _forward_impl.1
= control target key start
LH: loop header
LB: loop body
LE: loop exit
PB: predicated region body
PF: predicated region fallthrough
CT: control target
= control target key end

     0   :  { %11 = vsyncpa [#allocation3], 0  ;;  %s1298_s0 = inlined_call_operand.hbm [shape: f32[2,8,128], index: 0, kind: input, shape index: {}]   ;;  %s1299_s1 = inlined_call_operand.hbm [shape: bf16[128,128], index: 1, kind: input, shape index: {}]   ;;  %s1300_s2 = inlined_call_operand.hbm [shape: bf16[128,384], index: 2, kind: input, shape index: {}]   ;;  %s1301_s3 = inlined_call_operand.hbm [shape: bf16[128,128], index: 3, kind: input, shape index: {}]   ;;  %s1302_s4 = inlined_call_operand.vmem [shape: f32[1,384], index: 4, kind: input, shape index: {}]   ;;  %s1303_s5 = inlined_call_operand.vmem [shape: f32[4,128], index: 5, kind: input, shape index: {}]   ;;  %s1304_s6 = inlined_call_operand.hbm [shape: f32[2,8,128], index: 6, kind: output, shape index: {}]  }
   0x1   :  { %12 = vsyncpa [#allocation6], 0 }
   0x2   :  { %13 = vsyncpa [#allocation9], 0 }
   0x3   :  { %14 = vsyncpa [#allocation4], 0  ;;  %s1066_s21 = smov [#allocation5]   ;;  %s948_s25 = scalar_lea.hbm %s1299_s1, 1024 }
   0x4   :  { %s32_s22 = sshll.u32 %s1066_s21, 4  ;;  %p949_p0 = scmp.ne.s32.totalorder %s1299_s1, %s948_s25  ;;  %s33_s22 = int_to_ptr.vmem [resolvable:$true] %s32_s22 }
   0x5   :  { %p952_p1 = scmp.lt.u32.totalorder %s948_s25, %s1299_s1 }
   0x7   :  { %p954_p2 = pnand %p952_p1, %p949_p0 }
   0x9   :  { %957 = shalt.err (!%p954_p2)
}
   0xa   :  { %s958_s30 = scalar_lea.vmem %s33_s22, 1024  ;;  %p963_p4 = scmp.lt.s32.totalorder %s33_s22, %s33_s22 }
   0xb   :  { %p959_p3 = scmp.ne.s32.totalorder %s33_s22, %s958_s30  ;;  %p964_p5 = scmp.lt.s32.totalorder %s958_s30, %s958_s30 }
   0xd   :  { %p965_p6 = por %p964_p5, %p963_p4 }
   0xf   :  { %p966_p7 = pnand %p965_p6, %p959_p3 }
  0x11   :  { %969 = shalt.err (!%p966_p7)
}
  0x12   :  { %s1067_s7 = smov 64   ;;  %s1068_s8 = smov 4  }
  0x13   :  { %38 = dma.hbm_to_vmem [thread:$0]  %s1299_s1, 1024, %s33_s22, [#allocation6], %s1067_s7, %s1067_s7, %s1068_s8  }
  0x14   :  { %s1069_s11 = smov [#allocation2]   ;;  %s970_s15 = scalar_lea.hbm %s1298_s0, 256 }
  0x15   :  { %s20_s12 = sshll.u32 %s1069_s11, 4  ;;  %p971_p8 = scmp.ne.s32.totalorder %s1298_s0, %s970_s15  ;;  %s21_s12 = int_to_ptr.vmem [resolvable:$true] %s20_s12 }
  0x16   :  { %p974_p9 = scmp.lt.u32.totalorder %s970_s15, %s1298_s0 }
  0x18   :  { %p976_p10 = pnand %p974_p9, %p971_p8 }
  0x1a   :  { %979 = shalt.err (!%p976_p10)
}
  0x1b   :  { %s980_s20 = scalar_lea.vmem %s21_s12, 256  ;;  %p985_p12 = scmp.lt.s32.totalorder %s21_s12, %s21_s12 }
  0x1c   :  { %p981_p11 = scmp.ne.s32.totalorder %s21_s12, %s980_s20  ;;  %p986_p13 = scmp.lt.s32.totalorder %s980_s20, %s980_s20 }
  0x1e   :  { %p987_p0 = por %p986_p13, %p985_p12 }
  0x20   :  { %p988_p1 = pnand %p987_p0, %p981_p11 }
  0x22   :  { %991 = shalt.err (!%p988_p1)
}
  0x23   :  { %s1070_s1 = smov 128   ;;  %s1071_s21 = smov 8  }
  0x24   :  { %26 = dma.hbm_to_vmem [thread:$0]  %s1298_s0, 256, %s21_s12, [#allocation3], %s1070_s1, %s1070_s1, %s1071_s21  }
  0x25   :  { %s1072_s24 = smov [#allocation7]   ;;  %s992_s28 = scalar_lea.hbm %s1300_s2, 3072 }
  0x26   :  { %s44_s25 = sshll.u32 %s1072_s24, 4  ;;  %p993_p2 = scmp.ne.s32.totalorder %s1300_s2, %s992_s28  ;;  %s45_s25 = int_to_ptr.vmem [resolvable:$true] %s44_s25 }
  0x27   :  { %p996_p3 = scmp.lt.u32.totalorder %s992_s28, %s1300_s2 }
  0x29   :  { %p998_p4 = pnand %p996_p3, %p993_p2 }
  0x2b   :  { %1001 = shalt.err (!%p998_p4)
}
  0x2c   :  { %s1002_s11 = scalar_lea.vmem %s45_s25, 3072  ;;  %p1007_p6 = scmp.lt.s32.totalorder %s45_s25, %s45_s25 }
  0x2d   :  { %p1003_p5 = scmp.ne.s32.totalorder %s45_s25, %s1002_s11  ;;  %p1008_p7 = scmp.lt.s32.totalorder %s1002_s11, %s1002_s11 }
  0x2f   :  { %p1009_p8 = por %p1008_p7, %p1007_p6 }
  0x31   :  { %p1010_p9 = pnand %p1009_p8, %p1003_p5 }
  0x33   :  { %1013 = shalt.err (!%p1010_p9)
}
  0x34   :  { %s1073_s0 = smov 192   ;;  %s1074_s12 = smov 12  }
  0x35   :  { %50 = dma.hbm_to_vmem [thread:$0]  %s1300_s2, 3072, %s45_s25, [#allocation6], %s1073_s0, %s1073_s0, %s1074_s12  }
  0x36   :  { %s1075_s15 = smov [#allocation8]   ;;  %s1014_s19 = scalar_lea.hbm %s1301_s3, 1024 }
  0x37   :  { %s56_s16 = sshll.u32 %s1075_s15, 4  ;;  %p1015_p10 = scmp.ne.s32.totalorder %s1301_s3, %s1014_s19  ;;  %s57_s16 = int_to_ptr.vmem [resolvable:$true] %s56_s16 }
  0x38   :  { %p1018_p11 = scmp.lt.u32.totalorder %s1014_s19, %s1301_s3 }
  0x3a   :  { %p1020_p12 = pnand %p1018_p11, %p1015_p10 }
  0x3c   :  { %1023 = shalt.err (!%p1020_p12)
}
  0x3d   :  { %s1024_s26 = scalar_lea.vmem %s57_s16, 1024  ;;  %p1029_p0 = scmp.lt.s32.totalorder %s57_s16, %s57_s16 }
  0x3e   :  { %p1025_p13 = scmp.ne.s32.totalorder %s57_s16, %s1024_s26  ;;  %p1030_p1 = scmp.lt.s32.totalorder %s1024_s26, %s1024_s26 }
  0x40   :  { %p1031_p2 = por %p1030_p1, %p1029_p0 }
  0x42   :  { %p1032_p3 = pnand %p1031_p2, %p1025_p13 }
  0x44   :  { %1035 = shalt.err (!%p1032_p3)
}
  0x45   :  { %62 = dma.hbm_to_vmem [thread:$0]  %s1301_s3, 1024, %s57_s16, [#allocation9], %s1067_s7, %s1067_s7, %s1068_s8  }
  0x46   :  { %1058 = dma.done.wait [#allocation3], 256  }
  0x47   :  { %1059 = vsyncadd [#allocation3], 4294967040 }
  0x48   :  { %1060 = dma.done.wait [#allocation6], 4096  }
  0x49   :  { %1061 = vsyncadd [#allocation6], 4294963200 }
  0x4a   :  { %1062 = dma.done.wait [#allocation9], 1024  }
  0x4b   :  { %1063 = vsyncadd [#allocation9], 4294966272  ;;  %v1076_v0 = vmov 0.0   ;;  %vm1077_vm0 = vmmov 0   ;;  %v1175_v1 = vld [vmem:[#allocation5] sm:$0xff]   ;;  %v1178_v2 = vld [vmem:[#allocation5 + $0x8] sm:$0xff]   ;;  %v100_v37 = vlaneseq }
  0x4c   :  { %790 = vmatprep.subr.bf16.mxu0 %v1076_v0  ;;  %806 = vmatprep.mubr.msk.bf16.mxu0 %vm1077_vm0, %v1076_v0  ;;  %v1182_v3 = vld [vmem:[#allocation5 + $0x10] sm:$0xff]   ;;  %v894_v5 = vld [vmem:[#allocation7] ss:$12 sps:$4 sm:$0xff]   ;;  %v1186_v6 = vld [vmem:[#allocation5 + $0x18] sm:$0xff]   ;;  %v1078_v36 = vmov 0  }
  0x4d   :  { %791 = vmatpush3.bf16.msra.mxu0 %v1175_v1  ;;  %v892_v4 = vld [vmem:[#allocation7 + $0x4] ss:$12 sps:$4 sm:$0xff]   ;;  %v896_v7 = vld [vmem:[#allocation7 + $0x1c] ss:$12 sps:$4 sm:$0xff]   ;;  %v900_v10 = vld [vmem:[#allocation7 + $0x34] ss:$12 sps:$4 sm:$0xff]   ;;  %403 = vmatprep.mubr.bf16.mxu1 %v1078_v36 }
  0x4e   :  { %792 = vmatprep.subr.bf16.mxu0 %v1076_v0  ;;  %371 = vmatprep.subr.bf16.mxu1 %v892_v4  ;;  %v898_v8 = vld [vmem:[#allocation7 + $0x18] ss:$12 sps:$4 sm:$0xff]   ;;  %v902_v11 = vld [vmem:[#allocation7 + $0x30] ss:$12 sps:$4 sm:$0xff]   ;;  %v1194_v13 = vld [vmem:[#allocation5 + $0x28] sm:$0xff]   ;;  %v1218_v38 = vshrl.u32 %v100_v37, 7 }
  0x4f   :  { %372 = vmatpush1.bf16.msra.mxu1 %v894_v5  ;;  %v1190_v9 = vld [vmem:[#allocation5 + $0x20] sm:$0xff]   ;;  %v904_v12 = vld [vmem:[#allocation7 + $0x4c] ss:$12 sps:$4 sm:$0xff]   ;;  %v906_v14 = vld [vmem:[#allocation7 + $0x48] ss:$12 sps:$4 sm:$0xff]  }
  0x50   :  { %373 = vmatprep.subr.bf16.mxu1 %v896_v7  ;;  %v908_v15 = vld [vmem:[#allocation7 + $0x64] ss:$12 sps:$4 sm:$0xff]   ;;  %v910_v17 = vld [vmem:[#allocation7 + $0x60] ss:$12 sps:$4 sm:$0xff]   ;;  %v912_v18 = vld [vmem:[#allocation7 + $0x7c] ss:$12 sps:$4 sm:$0xff]  }
  0x51   :  { %793 = vmatpush3.bf16.msra.mxu0 %v1178_v2  ;;  %v1198_v16 = vld [vmem:[#allocation5 + $0x30] sm:$0xff]   ;;  %v1201_v19 = vld [vmem:[#allocation5 + $0x38] sm:$0xff]   ;;  %v899_v26 = vld [vmem:[#allocation7 + $0x20] ss:$12 sps:$4 sm:$0xff]   ;;  %v102_v39 = vsub.s32 0, %v1218_v38  ;;  %v234_v50 = vsub.s32 1, %v1218_v38 }
  0x52   :  { %794 = vmatprep.subr.bf16.mxu0 %v1076_v0  ;;  %v81_v20 = vld [vmem:[#allocation2] sm:$0xff]  ;;  %v82_v21 = vld [vmem:[#allocation2 + $0x8] sm:$0xff]  ;;  %v915_v30 = vld [vmem:[#allocation7 + $0x80] ss:$12 sps:$4 sm:$0xff]   ;;  %v238_v37 = vsub.s32 2, %v1218_v38 }
  0x53   :  { %374 = vmatpush1.bf16.msra.mxu1 %v898_v8  ;;  %v914_v22 = vld [vmem:[#allocation7 + $0x78] ss:$12 sps:$4 sm:$0xff]   ;;  %v916_v23 = vld [vmem:[#allocation7 + $0x94] ss:$12 sps:$4 sm:$0xff]   ;;  %v99_v25 = vpack.c.bf16 %v82_v21, %v81_v20  ;;  %v907_v28 = vld [vmem:[#allocation7 + $0x50] ss:$12 sps:$4 sm:$0xff]  }
  0x54   :  { %375 = vmatprep.subr.bf16.mxu1 %v900_v10  ;;  %v895_v24 = vld [vmem:[#allocation7 + $0x8] ss:$12 sps:$4 sm:$0xff]   ;;  %v903_v27 = vld [vmem:[#allocation7 + $0x38] ss:$12 sps:$4 sm:$0xff]   ;;  %v918_v31 = vld [vmem:[#allocation7 + $0x90] ss:$12 sps:$4 sm:$0xff]  }
  0x55   :  { %795 = vmatpush3.bf16.msra.mxu0 %v1182_v3  ;;  %v911_v29 = vld [vmem:[#allocation7 + $0x68] ss:$12 sps:$4 sm:$0xff]   ;;  %v919_v32 = vld [vmem:[#allocation7 + $0x98] ss:$12 sps:$4 sm:$0xff]   ;;  %v923_v35 = vld [vmem:[#allocation7 + $0xb0] ss:$12 sps:$4 sm:$0xff]  }
  0x56   :  { %796 = vmatprep.subr.bf16.mxu0 %v1076_v0  ;;  %v920_v33 = vld [vmem:[#allocation7 + $0xac] ss:$12 sps:$4 sm:$0xff]   ;;  %v922_v34 = vld [vmem:[#allocation7 + $0xa8] ss:$12 sps:$4 sm:$0xff]   ;;  %v1224_v40 = vld [vmem:[%s1303_s5] sm:$0xf] }
  0x57   :  { %376 = vmatpush1.bf16.msra.mxu1 %v902_v11  ;;  %v1227_v41 = vrot.slane %v1224_v40, %v102_v39  ;;  %v1253_v49 = vld [vmem:[%s1302_s4] sm:$0x7]  ;;  %v925_v7 = vld [vmem:[#allocation8 + $0x8] sm:$0xff]   ;;  %v928_v10 = vld [vmem:[#allocation8 + $0x20] sm:$0xff]   ;;  %s1079_s4 = smov [#allocation10]  }
  0x58   :  { %377 = vmatprep.subr.bf16.mxu1 %v904_v12  ;;  %v231_v51 = vrot.slane %v1253_v49, %v102_v39  ;;  %v235_v52 = vrot.slane %v1253_v49, %v234_v50  ;;  %v926_v8 = vld [vmem:[#allocation8 + $0x10] sm:$0xff]   ;;  %v929_v11 = vld [vmem:[#allocation8 + $0x28] sm:$0xff]   ;;  %v239_v39 = vrot.slane %v1253_v49, %v238_v37  ;;  %v521_v49 = vrot.slane %v1224_v40, %v234_v50  ;;  %s700_s27 = sshll.u32 %s1079_s4, 4  ;;  %s701_s27 = int_to_ptr.vmem [resolvable:$true] %s700_s27 }
  0x59   :  { %797 = vmatpush3.bf16.msra.mxu0 %v1186_v6  ;;  %v930_v12 = vld [vmem:[#allocation8 + $0x30] sm:$0xff]   ;;  %s1036_s28 = scalar_lea.vmem %s701_s27, 256  ;;  %p1041_p5 = scmp.lt.s32.totalorder %s701_s27, %s701_s27 }
  0x5a   :  { %798 = vmatprep.subr.bf16.mxu0 %v1076_v0  ;;  %p1037_p4 = scmp.ne.s32.totalorder %s701_s27, %s1036_s28  ;;  %p1042_p6 = scmp.lt.s32.totalorder %s1036_s28, %s1036_s28 }
  0x5b   :  { %378 = vmatpush1.bf16.msra.mxu1 %v906_v14 }
  0x5c   :  { %379 = vmatprep.subr.bf16.mxu1 %v908_v15  ;;  %p1043_p7 = por %p1042_p6, %p1041_p5 }
  0x5d   :  { %799 = vmatpush3.bf16.msra.mxu0 %v1190_v9 }
  0x5e   :  { %800 = vmatprep.subr.bf16.mxu0 %v1076_v0  ;;  %p1044_p8 = pnand %p1043_p7, %p1037_p4 }
  0x5f   :  { %380 = vmatpush1.bf16.msra.mxu1 %v910_v17 }
  0x60   :  { %381 = vmatprep.subr.bf16.mxu1 %v912_v18 }
  0x61   :  { %801 = vmatpush3.bf16.msra.mxu0 %v1194_v13 }
  0x62   :  { %802 = vmatprep.subr.bf16.mxu0 %v1076_v0 }
  0x63   :  { %382 = vmatpush1.bf16.msra.mxu1 %v914_v22 }
  0x64   :  { %383 = vmatprep.subr.bf16.mxu1 %v916_v23 }
  0x65   :  { %803 = vmatpush3.bf16.msra.mxu0 %v1198_v16 }
  0x66   :  { %804 = vmatprep.subr.bf16.mxu0 %v1076_v0 }
  0x67   :  { %384 = vmatpush1.bf16.msra.mxu1 %v918_v31 }
  0x68   :  { %385 = vmatprep.subr.bf16.mxu1 %v920_v33 }
  0x69   :  { %805 = vmatpush3.bf16.msra.mxu0 %v1201_v19 }
  0x6a   :  { %810 = vmatprep.subr.bf16.mxu0 %v1076_v0 }
  0x6b   :  { %386 = vmatpush1.bf16.msra.mxu1 %v922_v34 }
  0x6c   :  { %807 = vmatmul.mubr.bf16.vlgmr.msra.gmra.mrb[0].mxu0 %v99_v25  ;;  %830 = vmatprep.subr.bf16.mxu1 %v1076_v0 }
  0x6d   :  { %811 = vmatpush3.bf16.msra.mxu0 %v895_v24  ;;  %826 = vmatprep.mubr.msk.bf16.mxu0 %vm1077_vm0, %v1076_v0 }
  0x6e   :  { %812 = vmatprep.subr.bf16.mxu0 %v1076_v0 }
  0x71   :  { %813 = vmatpush3.bf16.msra.mxu0 %v899_v26 }
  0x72   :  { %814 = vmatprep.subr.bf16.mxu0 %v1076_v0 }
  0x75   :  { %815 = vmatpush3.bf16.msra.mxu0 %v903_v27 }
  0x76   :  { %816 = vmatprep.subr.bf16.mxu0 %v1076_v0 }
  0x79   :  { %817 = vmatpush3.bf16.msra.mxu0 %v907_v28 }
  0x7a   :  { %818 = vmatprep.subr.bf16.mxu0 %v1076_v0 }
  0x7d   :  { %819 = vmatpush3.bf16.msra.mxu0 %v911_v29 }
  0x7e   :  { %820 = vmatprep.subr.bf16.mxu0 %v1076_v0 }
  0x81   :  { %821 = vmatpush3.bf16.msra.mxu0 %v915_v30 }
  0x82   :  { %822 = vmatprep.subr.bf16.mxu0 %v1076_v0 }
  0x85   :  { %823 = vmatpush3.bf16.msra.mxu0 %v919_v32 }
  0x86   :  { %824 = vmatprep.subr.bf16.mxu0 %v1076_v0 }
  0x89   :  { %825 = vmatpush3.bf16.msra.mxu0 %v923_v35 }
  0x8a   :  { %850 = vmatprep.subr.bf16.mxu0 %v1076_v0 }
 0x13f   :  { %v186_v42 = vpop.f32.mrb[0].mxu0 }
 0x140   :  { %v808_v43 = vpop.f32.mrb[1].mxu0  ;;  %v187_v45 = vadd.f32 %v186_v42, %v1227_v41 }
 0x141   :  { %v189_v44 = vpop.f32.mrb[2].mxu0 }
 0x142   :  { %v190_v46 = vadd.f32 %v189_v44, %v1227_v41  ;;  %v809_v47 = vpop.f32.mrb[3].mxu0 }
 0x144   :  { %v193_v48 = vpack.c.bf16 %v190_v46, %v187_v45 }
 0x146   :  { %404 = vmatmul.mubr.bf16.vlgmr.msra.gmra.mrb[0].mxu1 %v193_v48  ;;  %827 = vmatmul.mubr.bf16.vlgmr.msra.gmra.mrb[4].mxu0 %v193_v48 }
 0x147   :  { %846 = vmatprep.mubr.msk.bf16.mxu1 %vm1077_vm0, %v1076_v0  ;;  %851 = vmatpush3.bf16.msra.mxu0 %v1175_v1 }
 0x148   :  { %852 = vmatprep.subr.bf16.mxu0 %v1076_v0  ;;  %866 = vmatprep.mubr.msk.bf16.mxu0 %vm1077_vm0, %v1076_v0 }
 0x14b   :  { %853 = vmatpush3.bf16.msra.mxu0 %v1178_v2 }
 0x14c   :  { %854 = vmatprep.subr.bf16.mxu0 %v1076_v0 }
 0x14f   :  { %855 = vmatpush3.bf16.msra.mxu0 %v1182_v3 }
 0x150   :  { %856 = vmatprep.subr.bf16.mxu0 %v1076_v0 }
 0x153   :  { %857 = vmatpush3.bf16.msra.mxu0 %v1186_v6  ;;  %v924_v6 = vld [vmem:[#allocation8] sm:$0xff]  }
 0x154   :  { %858 = vmatprep.subr.bf16.mxu0 %v1076_v0  ;;  %831 = vmatpush3.bf16.msra.mxu1 %v924_v6 }
 0x155   :  { %832 = vmatprep.subr.bf16.mxu1 %v1076_v0 }
 0x157   :  { %859 = vmatpush3.bf16.msra.mxu0 %v1190_v9  ;;  %v927_v9 = vld [vmem:[#allocation8 + $0x18] sm:$0xff]  }
 0x158   :  { %860 = vmatprep.subr.bf16.mxu0 %v1076_v0  ;;  %833 = vmatpush3.bf16.msra.mxu1 %v925_v7 }
 0x159   :  { %834 = vmatprep.subr.bf16.mxu1 %v1076_v0 }
 0x15b   :  { %861 = vmatpush3.bf16.msra.mxu0 %v1194_v13  ;;  %v931_v13 = vld [vmem:[#allocation8 + $0x38] sm:$0xff]  }
 0x15c   :  { %862 = vmatprep.subr.bf16.mxu0 %v1076_v0  ;;  %835 = vmatpush3.bf16.msra.mxu1 %v926_v8 }
 0x15d   :  { %836 = vmatprep.subr.bf16.mxu1 %v1076_v0 }
 0x15f   :  { %863 = vmatpush3.bf16.msra.mxu0 %v1198_v16 }
 0x160   :  { %864 = vmatprep.subr.bf16.mxu0 %v1076_v0  ;;  %837 = vmatpush3.bf16.msra.mxu1 %v927_v9 }
 0x161   :  { %838 = vmatprep.subr.bf16.mxu1 %v1076_v0 }
 0x163   :  { %865 = vmatpush3.bf16.msra.mxu0 %v1201_v19 }
 0x164   :  { %839 = vmatpush3.bf16.msra.mxu1 %v928_v10 }
 0x165   :  { %840 = vmatprep.subr.bf16.mxu1 %v1076_v0 }
 0x168   :  { %841 = vmatpush3.bf16.msra.mxu1 %v929_v11 }
 0x169   :  { %842 = vmatprep.subr.bf16.mxu1 %v1076_v0 }
 0x16c   :  { %843 = vmatpush3.bf16.msra.mxu1 %v930_v12 }
 0x16d   :  { %844 = vmatprep.subr.bf16.mxu1 %v1076_v0 }
 0x170   :  { %845 = vmatpush3.bf16.msra.mxu1 %v931_v13 }
 0x219   :  { %v405_v53 = vpop.f32.mrb[0].mxu1  ;;  %v1260_v54 = vpop.f32.mrb[4].mxu0 }
 0x21a   :  { %v406_v55 = vadd.f32 %v405_v53, %v231_v51  ;;  %v407_v56 = vpop.f32.mrb[1].mxu1  ;;  %v828_v57 = vpop.f32.mrb[5].mxu0  ;;  %v449_v43 = vadd.f32 %v1260_v54, %v239_v39 }
 0x21b   :  { %v408_v58 = vadd.f32 %v407_v56, %v235_v52  ;;  %v409_v59 = vpop.f32.mrb[2].mxu1  ;;  %v1262_v60 = vpop.f32.mrb[6].mxu0 }
 0x21c   :  { %v410_v61 = vadd.f32 %v409_v59, %v231_v51  ;;  %v411_v62 = vpop.f32.mrb[3].mxu1  ;;  %v829_v63 = vpop.f32.mrb[7].mxu0  ;;  %v452_v44 = vadd.f32 %v1262_v60, %v239_v39 }
 0x21d   :  { %v412_v1 = vadd.f32 %v411_v62, %v235_v52  ;;  %v455_v2 = vmul.f32 %v408_v58, %v406_v55 }
 0x21e   :  { %v464_v3 = vmul.f32 %v410_v61, %v408_v58 }
 0x21f   :  { %457 = vadd.xlane.f32.xlu0 %v455_v2  ;;  %v463_v4 = vmul.f32 %v412_v1, %v406_v55  ;;  %v456_v5 = vmul.f32 %v412_v1, %v410_v61 }
 0x221   :  { %465 = vadd.xlane.f32.xlu1 %v463_v4 }
 0x223   :  { %459 = vadd.xlane.f32.xlu0 %v456_v5 }
 0x225   :  { %467 = vadd.xlane.f32.xlu1 %v464_v3 }
 0x2ac   :  { %v458_v14 = vpop.xlane.xlu0 %457 }
 0x2ad   :  { %v461_v16 = vmul.f32 0.17677669, %v458_v14 }
 0x2ae   :  { %v466_v15 = vpop.xlane.xlu1 %465 }
 0x2af   :  { %v469_v17 = vmul.f32 0.17677669, %v466_v15 }
 0x2b0   :  { %v460_v18 = vpop.xlane.xlu0 %459 }
 0x2b1   :  { %v471_v19 = vmax.f32 %v461_v16, %v469_v17  ;;  %v462_v23 = vmul.f32 0.17677669, %v460_v18 }
 0x2b2   :  { %v468_v20 = vpop.xlane.xlu1 %467 }
 0x2b3   :  { %v473_v21 = vsub.f32 %v461_v16, %v471_v19  ;;  %v479_v22 = vsub.f32 %v469_v17, %v471_v19  ;;  %v470_v24 = vmul.f32 0.17677669, %v468_v20 }
 0x2b5   :  { %v475_v25 = vmul.f32 1.442695, %v473_v21  ;;  %v481_v26 = vmul.f32 1.442695, %v479_v22  ;;  %v472_v27 = vmax.f32 %v462_v23, %v470_v24 }
 0x2b7   :  { %932 = vpow2.f32 %v475_v25  ;;  %v474_v28 = vsub.f32 %v462_v23, %v472_v27  ;;  %v480_v29 = vsub.f32 %v470_v24, %v472_v27  ;;  %v689_v25 = vsub.s32 3, %v1218_v38 }
 0x2b8   :  { %934 = vpow2.f32 %v481_v26  ;;  %v684_v26 = vrot.slane %v1224_v40, %v238_v37 }
 0x2b9   :  { %v477_v0 = vmul.f32 1.442695, %v474_v28  ;;  %v483_v30 = vmul.f32 1.442695, %v480_v29 }
 0x2bb   :  { %936 = vpow2.f32 %v477_v0 }
 0x2bc   :  { %938 = vpow2.f32 %v483_v30  ;;  %v690_v30 = vrot.slane %v1224_v40, %v689_v25 }
 0x2c1   :  { %v933_v31 = vpop.eup %932 }
 0x2c2   :  { %v935_v32 = vpop.eup %934 }
 0x2c3   :  { %v485_v33 = vadd.f32 %v935_v32, %v933_v31 }
 0x2c5   :  { %v937_v34 = vpop.eup %936  ;;  %940 = vrcp.f32 %v485_v33 }
 0x2c6   :  { %v939_v35 = vpop.eup %938 }
 0x2c7   :  { %v486_v36 = vadd.f32 %v939_v35, %v937_v34 }
 0x2c9   :  { %942 = vrcp.f32 %v486_v36 }
 0x2cf   :  { %v941_v42 = vpop.eup %940 }
 0x2d0   :  { %v491_v45 = vmul.f32 %v941_v42, %v933_v31  ;;  %v495_v46 = vmul.f32 %v941_v42, %v935_v32 }
 0x2d2   :  { %v493_v47 = vmul.f32 %v491_v45, %v449_v43  ;;  %v497_v48 = vmul.f32 %v495_v46, %v452_v44 }
 0x2d3   :  { %v943_v51 = vpop.eup %942 }
 0x2d4   :  { %v492_v52 = vmul.f32 %v943_v51, %v937_v34  ;;  %v496_v53 = vmul.f32 %v943_v51, %v939_v35  ;;  %v499_v55 = vadd.f32 %v497_v48, %v493_v47 }
 0x2d6   :  { %v494_v56 = vmul.f32 %v492_v52, %v452_v44  ;;  %v498_v57 = vmul.f32 %v496_v53, %v449_v43 }
 0x2d8   :  { %v500_v58 = vadd.f32 %v498_v57, %v494_v56 }
 0x2da   :  { %v501_v59 = vpack.c.bf16 %v500_v58, %v499_v55 }
 0x2dc   :  { %847 = vmatmul.mubr.bf16.vlgmr.msra.gmra.mrb[4].mxu1 %v501_v59 }
 0x3af   :  { %v604_v54 = vpop.f32.mrb[4].mxu1 }
 0x3b0   :  { %v848_v61 = vpop.f32.mrb[5].mxu1  ;;  %v605_v62 = vadd.f32 %v604_v54, %v521_v49 }
 0x3b1   :  { %v607_v60 = vpop.f32.mrb[6].mxu1 }
 0x3b2   :  { %v608_v63 = vadd.f32 %v607_v60, %v521_v49  ;;  %v849_v1 = vpop.f32.mrb[7].mxu1 }
 0x3b4   :  { %v611_v2 = vpack.c.bf16 %v608_v63, %v605_v62 }
 0x3b6   :  { %867 = vmatmul.mubr.bf16.vlgmr.msra.gmra.mrb[8].mxu0 %v611_v2 }
 0x489   :  { %v646_v3 = vpop.f32.mrb[8].mxu0 }
 0x48a   :  { %v647_v4 = vadd.f32 %v646_v3, %v1227_v41  ;;  %v868_v5 = vpop.f32.mrb[9].mxu0 }
 0x48b   :  { %v649_v6 = vpop.f32.mrb[10].mxu0 }
 0x48c   :  { %v653_v7 = vmax.f32 %v647_v4, 0.0  ;;  %v650_v8 = vadd.f32 %v649_v6, %v1227_v41  ;;  %v869_v9 = vpop.f32.mrb[11].mxu0 }
 0x48e   :  { %v654_v10 = vmax.f32 %v650_v8, 0.0  ;;  %655 = vadd.xlane.f32.xlu0 %v653_v7  ;;  %v661_v50 = vmul.f32 %v653_v7, %v653_v7 }
 0x490   :  { %657 = vadd.xlane.f32.xlu1 %v654_v10  ;;  %v662_v11 = vmul.f32 %v654_v10, %v654_v10 }
 0x492   :  { %663 = vadd.xlane.f32.xlu0 %v661_v50 }
 0x494   :  { %665 = vadd.xlane.f32.xlu1 %v662_v11 }
 0x51b   :  { %v656_v12 = vpop.xlane.xlu0 %655 }
 0x51c   :  { %v659_v13 = vmul.f32 0.03125, %v656_v12 }
 0x51d   :  { %v658_v14 = vpop.xlane.xlu1 %657 }
 0x51e   :  { %v660_v15 = vmul.f32 0.03125, %v658_v14  ;;  %v669_v17 = vmul.f32 %v659_v13, %v659_v13  ;;  %v673_v27 = vsub.f32 %v653_v7, %v659_v13 }
 0x51f   :  { %v664_v16 = vpop.xlane.xlu0 %663 }
 0x520   :  { %v667_v18 = vmul.f32 0.03125, %v664_v16  ;;  %v670_v20 = vmul.f32 %v660_v15, %v660_v15  ;;  %v674_v29 = vsub.f32 %v654_v10, %v660_v15 }
 0x521   :  { %v666_v19 = vpop.xlane.xlu1 %665 }
 0x522   :  { %v671_v21 = vsub.f32 %v667_v18, %v669_v17  ;;  %v668_v22 = vmul.f32 0.03125, %v666_v19 }
 0x524   :  { %v675_v41 = vadd.f32 1e-05, %v671_v21  ;;  %v672_v23 = vsub.f32 %v668_v22, %v670_v20 }
 0x526   :  { %944 = vrsqrt.f32 %v675_v41  ;;  %v676_v24 = vadd.f32 1e-05, %v672_v23 }
 0x528   :  { %946 = vrsqrt.f32 %v676_v24 }
 0x530   :  { %v945_v28 = vpop.eup %944 }
 0x531   :  { %v679_v0 = vmul.f32 %v945_v28, %v673_v27 }
 0x532   :  { %v947_v31 = vpop.eup %946 }
 0x533   :  { %v680_v32 = vmul.f32 %v947_v31, %v674_v29  ;;  %v685_v33 = vmul.f32 %v684_v26, %v679_v0 }
 0x535   :  { %v686_v34 = vmul.f32 %v684_v26, %v680_v32  ;;  %v691_v35 = vadd.f32 %v690_v30, %v685_v33 }
 0x537   :  { %v692_v36 = vadd.f32 %v690_v30, %v686_v34  ;;  %693 = vst [vmem:[#allocation10] sm:$0xff] %v691_v35 }
 0x539   :  { %694 = vst [vmem:[#allocation10 + $0x8] sm:$0xff] %v692_v36 }
 0x53a   :  { %1047 = shalt.err (!%p1044_p8)
}
 0x53b   :  { %s1048_s9 = scalar_lea.hbm %s1304_s6, 256 }
 0x53c   :  { %p1049_p9 = scmp.ne.s32.totalorder %s1304_s6, %s1048_s9  ;;  %p1052_p10 = scmp.lt.u32.totalorder %s1048_s9, %s1304_s6 }
 0x53e   :  { %p1054_p11 = pnand %p1052_p10, %p1049_p9 }
 0x540   :  { %1057 = shalt.err (!%p1054_p11)
}
 0x541   :  { %706 = dma.vmem_to_hbm [thread:$0]  %s701_s27, 256, %s1304_s6, [#allocation4], %s1070_s1, %s1070_s1, %s1071_s21  }
 0x542   :  { %1064 = dma.done.wait [#allocation4], 256  }
 0x543   :  { %1065 = vsyncadd [#allocation4], 4294967040 }
 0x544   :  { %710 = vsyncpa [#allocation3], 1 }
 0x545   :  { %711 = vsyncpa [#allocation6], 1 }
 0x546   :  { %712 = vsyncpa [#allocation9], 1 }
 0x547   :  { %713 = vsyncpa [#allocation4], 1 }

// kernel: _forward_impl.1
= control target key start
LH: loop header
LB: loop body
LE: loop exit
PB: predicated region body
PF: predicated region fallthrough
CT: control target
= control target key end

     0   :  { %11 = vsyncpa [#allocation3], 0  ;;  %s1298_s0 = inlined_call_operand.hbm [shape: f32[2,8,128], index: 0, kind: input, shape index: {}]   ;;  %s1299_s1 = inlined_call_operand.hbm [shape: bf16[128,128], index: 1, kind: input, shape index: {}]   ;;  %s1300_s2 = inlined_call_operand.hbm [shape: bf16[128,384], index: 2, kind: input, shape index: {}]   ;;  %s1301_s3 = inlined_call_operand.hbm [shape: bf16[128,128], index: 3, kind: input, shape index: {}]   ;;  %s1302_s4 = inlined_call_operand.vmem [shape: f32[1,384], index: 4, kind: input, shape index: {}]   ;;  %s1303_s5 = inlined_call_operand.vmem [shape: f32[4,128], index: 5, kind: input, shape index: {}]   ;;  %s1304_s6 = inlined_call_operand.hbm [shape: f32[2,8,128], index: 6, kind: output, shape index: {}]  }
   0x1   :  { %12 = vsyncpa [#allocation6], 0 }
   0x2   :  { %13 = vsyncpa [#allocation9], 0 }
   0x3   :  { %14 = vsyncpa [#allocation4], 0  ;;  %s1066_s21 = smov [#allocation5]   ;;  %s948_s25 = scalar_lea.hbm %s1299_s1, 1024 }
   0x4   :  { %s32_s22 = sshll.u32 %s1066_s21, 4  ;;  %p949_p0 = scmp.ne.s32.totalorder %s1299_s1, %s948_s25  ;;  %s33_s22 = int_to_ptr.vmem [resolvable:$true] %s32_s22 }
   0x5   :  { %p952_p1 = scmp.lt.u32.totalorder %s948_s25, %s1299_s1 }
   0x7   :  { %p954_p2 = pnand %p952_p1, %p949_p0 }
   0x9   :  { %957 = shalt.err (!%p954_p2)
}
   0xa   :  { %s958_s30 = scalar_lea.vmem %s33_s22, 1024  ;;  %p963_p4 = scmp.lt.s32.totalorder %s33_s22, %s33_s22 }
   0xb   :  { %p959_p3 = scmp.ne.s32.totalorder %s33_s22, %s958_s30  ;;  %p964_p5 = scmp.lt.s32.totalorder %s958_s30, %s958_s30 }
   0xd   :  { %p965_p6 = por %p964_p5, %p963_p4 }
   0xf   :  { %p966_p7 = pnand %p965_p6, %p959_p3 }
  0x11   :  { %969 = shalt.err (!%p966_p7)
}
  0x12   :  { %s1067_s7 = smov 64   ;;  %s1068_s8 = smov 4  }
  0x13   :  { %38 = dma.hbm_to_vmem [thread:$0]  %s1299_s1, 1024, %s33_s22, [#allocation6], %s1067_s7, %s1067_s7, %s1068_s8  }
  0x14   :  { %s1069_s11 = smov [#allocation2]   ;;  %s970_s15 = scalar_lea.hbm %s1298_s0, 256 }
  0x15   :  { %s20_s12 = sshll.u32 %s1069_s11, 4  ;;  %p971_p8 = scmp.ne.s32.totalorder %s1298_s0, %s970_s15  ;;  %s21_s12 = int_to_ptr.vmem [resolvable:$true] %s20_s12 }
  0x16   :  { %p974_p9 = scmp.lt.u32.totalorder %s970_s15, %s1298_s0 }
  0x18   :  { %p976_p10 = pnand %p974_p9, %p971_p8 }
  0x1a   :  { %979 = shalt.err (!%p976_p10)
}
  0x1b   :  { %s980_s20 = scalar_lea.vmem %s21_s12, 256  ;;  %p985_p12 = scmp.lt.s32.totalorder %s21_s12, %s21_s12 }
  0x1c   :  { %p981_p11 = scmp.ne.s32.totalorder %s21_s12, %s980_s20  ;;  %p986_p13 = scmp.lt.s32.totalorder %s980_s20, %s980_s20 }
  0x1e   :  { %p987_p0 = por %p986_p13, %p985_p12 }
  0x20   :  { %p988_p1 = pnand %p987_p0, %p981_p11 }
  0x22   :  { %991 = shalt.err (!%p988_p1)
}
  0x23   :  { %s1070_s1 = smov 128   ;;  %s1071_s21 = smov 8  }
  0x24   :  { %26 = dma.hbm_to_vmem [thread:$0]  %s1298_s0, 256, %s21_s12, [#allocation3], %s1070_s1, %s1070_s1, %s1071_s21  }
  0x25   :  { %s1072_s24 = smov [#allocation7]   ;;  %s992_s28 = scalar_lea.hbm %s1300_s2, 3072 }
  0x26   :  { %s44_s25 = sshll.u32 %s1072_s24, 4  ;;  %p993_p2 = scmp.ne.s32.totalorder %s1300_s2, %s992_s28  ;;  %s45_s25 = int_to_ptr.vmem [resolvable:$true] %s44_s25 }
  0x27   :  { %p996_p3 = scmp.lt.u32.totalorder %s992_s28, %s1300_s2 }
  0x29   :  { %p998_p4 = pnand %p996_p3, %p993_p2 }
  0x2b   :  { %1001 = shalt.err (!%p998_p4)
}
  0x2c   :  { %s1002_s11 = scalar_lea.vmem %s45_s25, 3072  ;;  %p1007_p6 = scmp.lt.s32.totalorder %s45_s25, %s45_s25 }
  0x2d   :  { %p1003_p5 = scmp.ne.s32.totalorder %s45_s25, %s1002_s11  ;;  %p1008_p7 = scmp.lt.s32.totalorder %s1002_s11, %s1002_s11 }
  0x2f   :  { %p1009_p8 = por %p1008_p7, %p1007_p6 }
  0x31   :  { %p1010_p9 = pnand %p1009_p8, %p1003_p5 }
  0x33   :  { %1013 = shalt.err (!%p1010_p9)
}
  0x34   :  { %s1073_s0 = smov 192   ;;  %s1074_s12 = smov 12  }
  0x35   :  { %50 = dma.hbm_to_vmem [thread:$0]  %s1300_s2, 3072, %s45_s25, [#allocation6], %s1073_s0, %s1073_s0, %s1074_s12  }
  0x36   :  { %s1075_s15 = smov [#allocation8]   ;;  %s1014_s19 = scalar_lea.hbm %s1301_s3, 1024 }
  0x37   :  { %s56_s16 = sshll.u32 %s1075_s15, 4  ;;  %p1015_p10 = scmp.ne.s32.totalorder %s1301_s3, %s1014_s19  ;;  %s57_s16 = int_to_ptr.vmem [resolvable:$true] %s56_s16 }
  0x38   :  { %p1018_p11 = scmp.lt.u32.totalorder %s1014_s19, %s1301_s3 }
  0x3a   :  { %p1020_p12 = pnand %p1018_p11, %p1015_p10 }
  0x3c   :  { %1023 = shalt.err (!%p1020_p12)
}
  0x3d   :  { %s1024_s26 = scalar_lea.vmem %s57_s16, 1024  ;;  %p1029_p0 = scmp.lt.s32.totalorder %s57_s16, %s57_s16 }
  0x3e   :  { %p1025_p13 = scmp.ne.s32.totalorder %s57_s16, %s1024_s26  ;;  %p1030_p1 = scmp.lt.s32.totalorder %s1024_s26, %s1024_s26 }
  0x40   :  { %p1031_p2 = por %p1030_p1, %p1029_p0 }
  0x42   :  { %p1032_p3 = pnand %p1031_p2, %p1025_p13 }
  0x44   :  { %1035 = shalt.err (!%p1032_p3)
}
  0x45   :  { %62 = dma.hbm_to_vmem [thread:$0]  %s1301_s3, 1024, %s57_s16, [#allocation9], %s1067_s7, %s1067_s7, %s1068_s8  }
  0x46   :  { %1058 = dma.done.wait [#allocation3], 256  }
  0x47   :  { %1059 = vsyncadd [#allocation3], 4294967040 }
  0x48   :  { %1060 = dma.done.wait [#allocation6], 4096  }
  0x49   :  { %1061 = vsyncadd [#allocation6], 4294963200 }
  0x4a   :  { %1062 = dma.done.wait [#allocation9], 1024  }
  0x4b   :  { %1063 = vsyncadd [#allocation9], 4294966272  ;;  %v1076_v0 = vmov 0.0   ;;  %vm1077_vm0 = vmmov 0   ;;  %v1175_v1 = vld [vmem:[#allocation5] sm:$0xff]   ;;  %v1178_v2 = vld [vmem:[#allocation5 + $0x8] sm:$0xff]   ;;  %v100_v37 = vlaneseq }
  0x4c   :  { %790 = vmatprep.subr.bf16.mxu0 %v1076_v0  ;;  %806 = vmatprep.mubr.msk.bf16.mxu0 %vm1077_vm0, %v1076_v0  ;;  %v1182_v3 = vld [vmem:[#allocation5 + $0x10] sm:$0xff]   ;;  %v894_v5 = vld [vmem:[#allocation7] ss:$12 sps:$4 sm:$0xff]   ;;  %v1186_v6 = vld [vmem:[#allocation5 + $0x18] sm:$0xff]   ;;  %v1078_v36 = vmov 0  }
  0x4d   :  { %791 = vmatpush3.bf16.msra.mxu0 %v1175_v1  ;;  %v892_v4 = vld [vmem:[#allocation7 + $0x4] ss:$12 sps:$4 sm:$0xff]   ;;  %v896_v7 = vld [vmem:[#allocation7 + $0x1c] ss:$12 sps:$4 sm:$0xff]   ;;  %v900_v10 = vld [vmem:[#allocation7 + $0x34] ss:$12 sps:$4 sm:$0xff]   ;;  %403 = vmatprep.mubr.bf16.mxu1 %v1078_v36 }
  0x4e   :  { %792 = vmatprep.subr.bf16.mxu0 %v1076_v0  ;;  %371 = vmatprep.subr.bf16.mxu1 %v892_v4  ;;  %v898_v8 = vld [vmem:[#allocation7 + $0x18] ss:$12 sps:$4 sm:$0xff]   ;;  %v902_v11 = vld [vmem:[#allocation7 + $0x30] ss:$12 sps:$4 sm:$0xff]   ;;  %v1194_v13 = vld [vmem:[#allocation5 + $0x28] sm:$0xff]   ;;  %v1218_v38 = vshrl.u32 %v100_v37, 7 }
  0x4f   :  { %372 = vmatpush1.bf16.msra.mxu1 %v894_v5  ;;  %v1190_v9 = vld [vmem:[#allocation5 + $0x20] sm:$0xff]   ;;  %v904_v12 = vld [vmem:[#allocation7 + $0x4c] ss:$12 sps:$4 sm:$0xff]   ;;  %v906_v14 = vld [vmem:[#allocation7 + $0x48] ss:$12 sps:$4 sm:$0xff]  }
  0x50   :  { %373 = vmatprep.subr.bf16.mxu1 %v896_v7  ;;  %v908_v15 = vld [vmem:[#allocation7 + $0x64] ss:$12 sps:$4 sm:$0xff]   ;;  %v910_v17 = vld [vmem:[#allocation7 + $0x60] ss:$12 sps:$4 sm:$0xff]   ;;  %v912_v18 = vld [vmem:[#allocation7 + $0x7c] ss:$12 sps:$4 sm:$0xff]  }
  0x51   :  { %793 = vmatpush3.bf16.msra.mxu0 %v1178_v2  ;;  %v1198_v16 = vld [vmem:[#allocation5 + $0x30] sm:$0xff]   ;;  %v1201_v19 = vld [vmem:[#allocation5 + $0x38] sm:$0xff]   ;;  %v899_v26 = vld [vmem:[#allocation7 + $0x20] ss:$12 sps:$4 sm:$0xff]   ;;  %v102_v39 = vsub.s32 0, %v1218_v38  ;;  %v234_v50 = vsub.s32 1, %v1218_v38 }
  0x52   :  { %794 = vmatprep.subr.bf16.mxu0 %v1076_v0  ;;  %v81_v20 = vld [vmem:[#allocation2] sm:$0xff]  ;;  %v82_v21 = vld [vmem:[#allocation2 + $0x8] sm:$0xff]  ;;  %v915_v30 = vld [vmem:[#allocation7 + $0x80] ss:$12 sps:$4 sm:$0xff]   ;;  %v238_v37 = vsub.s32 2, %v1218_v38 }
  0x53   :  { %374 = vmatpush1.bf16.msra.mxu1 %v898_v8  ;;  %v914_v22 = vld [vmem:[#allocation7 + $0x78] ss:$12 sps:$4 sm:$0xff]   ;;  %v916_v23 = vld [vmem:[#allocation7 + $0x94] ss:$12 sps:$4 sm:$0xff]   ;;  %v99_v25 = vpack.c.bf16 %v82_v21, %v81_v20  ;;  %v907_v28 = vld [vmem:[#allocation7 + $0x50] ss:$12 sps:$4 sm:$0xff]  }
  0x54   :  { %375 = vmatprep.subr.bf16.mxu1 %v900_v10  ;;  %v895_v24 = vld [vmem:[#allocation7 + $0x8] ss:$12 sps:$4 sm:$0xff]   ;;  %v903_v27 = vld [vmem:[#allocation7 + $0x38] ss:$12 sps:$4 sm:$0xff]   ;;  %v918_v31 = vld [vmem:[#allocation7 + $0x90] ss:$12 sps:$4 sm:$0xff]  }
  0x55   :  { %795 = vmatpush3.bf16.msra.mxu0 %v1182_v3  ;;  %v911_v29 = vld [vmem:[#allocation7 + $0x68] ss:$12 sps:$4 sm:$0xff]   ;;  %v919_v32 = vld [vmem:[#allocation7 + $0x98] ss:$12 sps:$4 sm:$0xff]   ;;  %v923_v35 = vld [vmem:[#allocation7 + $0xb0] ss:$12 sps:$4 sm:$0xff]  }
  0x56   :  { %796 = vmatprep.subr.bf16.mxu0 %v1076_v0  ;;  %v920_v33 = vld [vmem:[#allocation7 + $0xac] ss:$12 sps:$4 sm:$0xff]   ;;  %v922_v34 = vld [vmem:[#allocation7 + $0xa8] ss:$12 sps:$4 sm:$0xff]   ;;  %v1224_v40 = vld [vmem:[%s1303_s5] sm:$0xf] }
  0x57   :  { %376 = vmatpush1.bf16.msra.mxu1 %v902_v11  ;;  %v1227_v41 = vrot.slane %v1224_v40, %v102_v39  ;;  %v1253_v49 = vld [vmem:[%s1302_s4] sm:$0x7]  ;;  %v925_v7 = vld [vmem:[#allocation8 + $0x8] sm:$0xff]   ;;  %v928_v10 = vld [vmem:[#allocation8 + $0x20] sm:$0xff]   ;;  %s1079_s4 = smov [#allocation10]  }
  0x58   :  { %377 = vmatprep.subr.bf16.mxu1 %v904_v12  ;;  %v231_v51 = vrot.slane %v1253_v49, %v102_v39  ;;  %v235_v52 = vrot.slane %v1253_v49, %v234_v50  ;;  %v926_v8 = vld [vmem:[#allocation8 + $0x10] sm:$0xff]   ;;  %v929_v11 = vld [vmem:[#allocation8 + $0x28] sm:$0xff]   ;;  %v239_v39 = vrot.slane %v1253_v49, %v238_v37  ;;  %v521_v49 = vrot.slane %v1224_v40, %v234_v50  ;;  %s700_s27 = sshll.u32 %s1079_s4, 4  ;;  %s701_s27 = int_to_ptr.vmem [resolvable:$true] %s700_s27 }
  0x59   :  { %797 = vmatpush3.bf16.msra.mxu0 %v1186_v6  ;;  %v930_v12 = vld [vmem:[#allocation8 + $0x30] sm:$0xff]   ;;  %s1036_s28 = scalar_lea.vmem %s701_s27, 256  ;;  %p1041_p5 = scmp.lt.s32.totalorder %s701_s27, %s701_s27 }
  0x5a   :  { %798 = vmatprep.subr.bf16.mxu0 %v1076_v0  ;;  %p1037_p4 = scmp.ne.s32.totalorder %s701_s27, %s1036_s28  ;;  %p1042_p6 = scmp.lt.s32.totalorder %s1036_s28, %s1036_s28 }
  0x5b   :  { %378 = vmatpush1.bf16.msra.mxu1 %v906_v14 }
  0x5c   :  { %379 = vmatprep.subr.bf16.mxu1 %v908_v15  ;;  %p1043_p7 = por %p1042_p6, %p1041_p5 }
  0x5d   :  { %799 = vmatpush3.bf16.msra.mxu0 %v1190_v9 }
  0x5e   :  { %800 = vmatprep.subr.bf16.mxu0 %v1076_v0  ;;  %p1044_p8 = pnand %p1043_p7, %p1037_p4 }
  0x5f   :  { %380 = vmatpush1.bf16.msra.mxu1 %v910_v17 }
  0x60   :  { %381 = vmatprep.subr.bf16.mxu1 %v912_v18 }
  0x61   :  { %801 = vmatpush3.bf16.msra.mxu0 %v1194_v13 }
  0x62   :  { %802 = vmatprep.subr.bf16.mxu0 %v1076_v0 }
  0x63   :  { %382 = vmatpush1.bf16.msra.mxu1 %v914_v22 }
  0x64   :  { %383 = vmatprep.subr.bf16.mxu1 %v916_v23 }
  0x65   :  { %803 = vmatpush3.bf16.msra.mxu0 %v1198_v16 }
  0x66   :  { %804 = vmatprep.subr.bf16.mxu0 %v1076_v0 }
  0x67   :  { %384 = vmatpush1.bf16.msra.mxu1 %v918_v31 }
  0x68   :  { %385 = vmatprep.subr.bf16.mxu1 %v920_v33 }
  0x69   :  { %805 = vmatpush3.bf16.msra.mxu0 %v1201_v19 }
  0x6a   :  { %810 = vmatprep.subr.bf16.mxu0 %v1076_v0 }
  0x6b   :  { %386 = vmatpush1.bf16.msra.mxu1 %v922_v34 }
  0x6c   :  { %807 = vmatmul.mubr.bf16.vlgmr.msra.gmra.mrb[0].mxu0 %v99_v25  ;;  %830 = vmatprep.subr.bf16.mxu1 %v1076_v0 }
  0x6d   :  { %811 = vmatpush3.bf16.msra.mxu0 %v895_v24  ;;  %826 = vmatprep.mubr.msk.bf16.mxu0 %vm1077_vm0, %v1076_v0 }
  0x6e   :  { %812 = vmatprep.subr.bf16.mxu0 %v1076_v0 }
  0x71   :  { %813 = vmatpush3.bf16.msra.mxu0 %v899_v26 }
  0x72   :  { %814 = vmatprep.subr.bf16.mxu0 %v1076_v0 }
  0x75   :  { %815 = vmatpush3.bf16.msra.mxu0 %v903_v27 }
  0x76   :  { %816 = vmatprep.subr.bf16.mxu0 %v1076_v0 }
  0x79   :  { %817 = vmatpush3.bf16.msra.mxu0 %v907_v28 }
  0x7a   :  { %818 = vmatprep.subr.bf16.mxu0 %v1076_v0 }
  0x7d   :  { %819 = vmatpush3.bf16.msra.mxu0 %v911_v29 }
  0x7e   :  { %820 = vmatprep.subr.bf16.mxu0 %v1076_v0 }
  0x81   :  { %821 = vmatpush3.bf16.msra.mxu0 %v915_v30 }
  0x82   :  { %822 = vmatprep.subr.bf16.mxu0 %v1076_v0 }
  0x85   :  { %823 = vmatpush3.bf16.msra.mxu0 %v919_v32 }
  0x86   :  { %824 = vmatprep.subr.bf16.mxu0 %v1076_v0 }
  0x89   :  { %825 = vmatpush3.bf16.msra.mxu0 %v923_v35 }
  0x8a   :  { %850 = vmatprep.subr.bf16.mxu0 %v1076_v0 }
 0x13f   :  { %v186_v42 = vpop.f32.mrb[0].mxu0 }
 0x140   :  { %v808_v43 = vpop.f32.mrb[1].mxu0  ;;  %v187_v45 = vadd.f32 %v186_v42, %v1227_v41 }
 0x141   :  { %v189_v44 = vpop.f32.mrb[2].mxu0 }
 0x142   :  { %v190_v46 = vadd.f32 %v189_v44, %v1227_v41  ;;  %v809_v47 = vpop.f32.mrb[3].mxu0 }
 0x144   :  { %v193_v48 = vpack.c.bf16 %v190_v46, %v187_v45 }
 0x146   :  { %404 = vmatmul.mubr.bf16.vlgmr.msra.gmra.mrb[0].mxu1 %v193_v48  ;;  %827 = vmatmul.mubr.bf16.vlgmr.msra.gmra.mrb[4].mxu0 %v193_v48 }
 0x147   :  { %846 = vmatprep.mubr.msk.bf16.mxu1 %vm1077_vm0, %v1076_v0  ;;  %851 = vmatpush3.bf16.msra.mxu0 %v1175_v1 }
 0x148   :  { %852 = vmatprep.subr.bf16.mxu0 %v1076_v0  ;;  %866 = vmatprep.mubr.msk.bf16.mxu0 %vm1077_vm0, %v1076_v0 }
 0x14b   :  { %853 = vmatpush3.bf16.msra.mxu0 %v1178_v2 }
 0x14c   :  { %854 = vmatprep.subr.bf16.mxu0 %v1076_v0 }
 0x14f   :  { %855 = vmatpush3.bf16.msra.mxu0 %v1182_v3 }
 0x150   :  { %856 = vmatprep.subr.bf16.mxu0 %v1076_v0 }
 0x153   :  { %857 = vmatpush3.bf16.msra.mxu0 %v1186_v6  ;;  %v924_v6 = vld [vmem:[#allocation8] sm:$0xff]  }
 0x154   :  { %858 = vmatprep.subr.bf16.mxu0 %v1076_v0  ;;  %831 = vmatpush3.bf16.msra.mxu1 %v924_v6 }
 0x155   :  { %832 = vmatprep.subr.bf16.mxu1 %v1076_v0 }
 0x157   :  { %859 = vmatpush3.bf16.msra.mxu0 %v1190_v9  ;;  %v927_v9 = vld [vmem:[#allocation8 + $0x18] sm:$0xff]  }
 0x158   :  { %860 = vmatprep.subr.bf16.mxu0 %v1076_v0  ;;  %833 = vmatpush3.bf16.msra.mxu1 %v925_v7 }
 0x159   :  { %834 = vmatprep.subr.bf16.mxu1 %v1076_v0 }
 0x15b   :  { %861 = vmatpush3.bf16.msra.mxu0 %v1194_v13  ;;  %v931_v13 = vld [vmem:[#allocation8 + $0x38] sm:$0xff]  }
 0x15c   :  { %862 = vmatprep.subr.bf16.mxu0 %v1076_v0  ;;  %835 = vmatpush3.bf16.msra.mxu1 %v926_v8 }
 0x15d   :  { %836 = vmatprep.subr.bf16.mxu1 %v1076_v0 }
 0x15f   :  { %863 = vmatpush3.bf16.msra.mxu0 %v1198_v16 }
 0x160   :  { %864 = vmatprep.subr.bf16.mxu0 %v1076_v0  ;;  %837 = vmatpush3.bf16.msra.mxu1 %v927_v9 }
 0x161   :  { %838 = vmatprep.subr.bf16.mxu1 %v1076_v0 }
 0x163   :  { %865 = vmatpush3.bf16.msra.mxu0 %v1201_v19 }
 0x164   :  { %839 = vmatpush3.bf16.msra.mxu1 %v928_v10 }
 0x165   :  { %840 = vmatprep.subr.bf16.mxu1 %v1076_v0 }
 0x168   :  { %841 = vmatpush3.bf16.msra.mxu1 %v929_v11 }
 0x169   :  { %842 = vmatprep.subr.bf16.mxu1 %v1076_v0 }
 0x16c   :  { %843 = vmatpush3.bf16.msra.mxu1 %v930_v12 }
 0x16d   :  { %844 = vmatprep.subr.bf16.mxu1 %v1076_v0 }
 0x170   :  { %845 = vmatpush3.bf16.msra.mxu1 %v931_v13 }
 0x219   :  { %v405_v53 = vpop.f32.mrb[0].mxu1  ;;  %v1260_v54 = vpop.f32.mrb[4].mxu0 }
 0x21a   :  { %v406_v55 = vadd.f32 %v405_v53, %v231_v51  ;;  %v407_v56 = vpop.f32.mrb[1].mxu1  ;;  %v828_v57 = vpop.f32.mrb[5].mxu0  ;;  %v449_v43 = vadd.f32 %v1260_v54, %v239_v39 }
 0x21b   :  { %v408_v58 = vadd.f32 %v407_v56, %v235_v52  ;;  %v409_v59 = vpop.f32.mrb[2].mxu1  ;;  %v1262_v60 = vpop.f32.mrb[6].mxu0 }
 0x21c   :  { %v410_v61 = vadd.f32 %v409_v59, %v231_v51  ;;  %v411_v62 = vpop.f32.mrb[3].mxu1  ;;  %v829_v63 = vpop.f32.mrb[7].mxu0  ;;  %v452_v44 = vadd.f32 %v1262_v60, %v239_v39 }
 0x21d   :  { %v412_v1 = vadd.f32 %v411_v62, %v235_v52  ;;  %v455_v2 = vmul.f32 %v408_v58, %v406_v55 }
 0x21e   :  { %v464_v3 = vmul.f32 %v410_v61, %v408_v58 }
 0x21f   :  { %457 = vadd.xlane.f32.xlu0 %v455_v2  ;;  %v463_v4 = vmul.f32 %v412_v1, %v406_v55  ;;  %v456_v5 = vmul.f32 %v412_v1, %v410_v61 }
 0x221   :  { %465 = vadd.xlane.f32.xlu1 %v463_v4 }
 0x223   :  { %459 = vadd.xlane.f32.xlu0 %v456_v5 }
 0x225   :  { %467 = vadd.xlane.f32.xlu1 %v464_v3 }
 0x2ac   :  { %v458_v14 = vpop.xlane.xlu0 %457 }
 0x2ad   :  { %v461_v16 = vmul.f32 0.17677669, %v458_v14 }
 0x2ae   :  { %v466_v15 = vpop.xlane.xlu1 %465 }
 0x2af   :  { %v469_v17 = vmul.f32 0.17677669, %v466_v15 }
 0x2b0   :  { %v460_v18 = vpop.xlane.xlu0 %459 }
 0x2b1   :  { %v471_v19 = vmax.f32 %v461_v16, %v469_v17  ;;  %v462_v23 = vmul.f32 0.17677669, %v460_v18 }
 0x2b2   :  { %v468_v20 = vpop.xlane.xlu1 %467 }
 0x2b3   :  { %v473_v21 = vsub.f32 %v461_v16, %v471_v19  ;;  %v479_v22 = vsub.f32 %v469_v17, %v471_v19  ;;  %v470_v24 = vmul.f32 0.17677669, %v468_v20 }
 0x2b5   :  { %v475_v25 = vmul.f32 1.442695, %v473_v21  ;;  %v481_v26 = vmul.f32 1.442695, %v479_v22  ;;  %v472_v27 = vmax.f32 %v462_v23, %v470_v24 }
 0x2b7   :  { %932 = vpow2.f32 %v475_v25  ;;  %v474_v28 = vsub.f32 %v462_v23, %v472_v27  ;;  %v480_v29 = vsub.f32 %v470_v24, %v472_v27  ;;  %v689_v25 = vsub.s32 3, %v1218_v38 }
 0x2b8   :  { %934 = vpow2.f32 %v481_v26  ;;  %v684_v26 = vrot.slane %v1224_v40, %v238_v37 }
 0x2b9   :  { %v477_v0 = vmul.f32 1.442695, %v474_v28  ;;  %v483_v30 = vmul.f32 1.442695, %v480_v29 }
 0x2bb   :  { %936 = vpow2.f32 %v477_v0 }
 0x2bc   :  { %938 = vpow2.f32 %v483_v30  ;;  %v690_v30 = vrot.slane %v1224_v40, %v689_v25 }
 0x2c1   :  { %v933_v31 = vpop.eup %932 }
 0x2c2   :  { %v935_v32 = vpop.eup %934 }
 0x2c3   :  { %v485_v33 = vadd.f32 %v935_v32, %v933_v31 }
 0x2c5   :  { %v937_v34 = vpop.eup %936  ;;  %940 = vrcp.f32 %v485_v33 }
 0x2c6   :  { %v939_v35 = vpop.eup %938 }
 0x2c7   :  { %v486_v36 = vadd.f32 %v939_v35, %v937_v34 }
 0x2c9   :  { %942 = vrcp.f32 %v486_v36 }
 0x2cf   :  { %v941_v42 = vpop.eup %940 }
 0x2d0   :  { %v491_v45 = vmul.f32 %v941_v42, %v933_v31  ;;  %v495_v46 = vmul.f32 %v941_v42, %v935_v32 }
 0x2d2   :  { %v493_v47 = vmul.f32 %v491_v45, %v449_v43  ;;  %v497_v48 = vmul.f32 %v495_v46, %v452_v44 }
 0x2d3   :  { %v943_v51 = vpop.eup %942 }
 0x2d4   :  { %v492_v52 = vmul.f32 %v943_v51, %v937_v34  ;;  %v496_v53 = vmul.f32 %v943_v51, %v939_v35  ;;  %v499_v55 = vadd.f32 %v497_v48, %v493_v47 }
 0x2d6   :  { %v494_v56 = vmul.f32 %v492_v52, %v452_v44  ;;  %v498_v57 = vmul.f32 %v496_v53, %v449_v43 }
 0x2d8   :  { %v500_v58 = vadd.f32 %v498_v57, %v494_v56 }
 0x2da   :  { %v501_v59 = vpack.c.bf16 %v500_v58, %v499_v55 }
 0x2dc   :  { %847 = vmatmul.mubr.bf16.vlgmr.msra.gmra.mrb[4].mxu1 %v501_v59 }
 0x3af   :  { %v604_v54 = vpop.f32.mrb[4].mxu1 }
 0x3b0   :  { %v848_v61 = vpop.f32.mrb[5].mxu1  ;;  %v605_v62 = vadd.f32 %v604_v54, %v521_v49 }
 0x3b1   :  { %v607_v60 = vpop.f32.mrb[6].mxu1 }
 0x3b2   :  { %v608_v63 = vadd.f32 %v607_v60, %v521_v49  ;;  %v849_v1 = vpop.f32.mrb[7].mxu1 }
 0x3b4   :  { %v611_v2 = vpack.c.bf16 %v608_v63, %v605_v62 }
 0x3b6   :  { %867 = vmatmul.mubr.bf16.vlgmr.msra.gmra.mrb[8].mxu0 %v611_v2 }
 0x489   :  { %v646_v3 = vpop.f32.mrb[8].mxu0 }
 0x48a   :  { %v647_v4 = vadd.f32 %v646_v3, %v1227_v41  ;;  %v868_v5 = vpop.f32.mrb[9].mxu0 }
 0x48b   :  { %v649_v6 = vpop.f32.mrb[10].mxu0 }
 0x48c   :  { %v653_v7 = vmax.f32 %v647_v4, 0.0  ;;  %v650_v8 = vadd.f32 %v649_v6, %v1227_v41  ;;  %v869_v9 = vpop.f32.mrb[11].mxu0 }
 0x48e   :  { %v654_v10 = vmax.f32 %v650_v8, 0.0  ;;  %655 = vadd.xlane.f32.xlu0 %v653_v7  ;;  %v661_v50 = vmul.f32 %v653_v7, %v653_v7 }
 0x490   :  { %657 = vadd.xlane.f32.xlu1 %v654_v10  ;;  %v662_v11 = vmul.f32 %v654_v10, %v654_v10 }
 0x492   :  { %663 = vadd.xlane.f32.xlu0 %v661_v50 }
 0x494   :  { %665 = vadd.xlane.f32.xlu1 %v662_v11 }
 0x51b   :  { %v656_v12 = vpop.xlane.xlu0 %655 }
 0x51c   :  { %v659_v13 = vmul.f32 0.03125, %v656_v12 }
 0x51d   :  { %v658_v14 = vpop.xlane.xlu1 %657 }
 0x51e   :  { %v660_v15 = vmul.f32 0.03125, %v658_v14  ;;  %v669_v17 = vmul.f32 %v659_v13, %v659_v13  ;;  %v673_v27 = vsub.f32 %v653_v7, %v659_v13 }
 0x51f   :  { %v664_v16 = vpop.xlane.xlu0 %663 }
 0x520   :  { %v667_v18 = vmul.f32 0.03125, %v664_v16  ;;  %v670_v20 = vmul.f32 %v660_v15, %v660_v15  ;;  %v674_v29 = vsub.f32 %v654_v10, %v660_v15 }
 0x521   :  { %v666_v19 = vpop.xlane.xlu1 %665 }
 0x522   :  { %v671_v21 = vsub.f32 %v667_v18, %v669_v17  ;;  %v668_v22 = vmul.f32 0.03125, %v666_v19 }
 0x524   :  { %v675_v41 = vadd.f32 1e-05, %v671_v21  ;;  %v672_v23 = vsub.f32 %v668_v22, %v670_v20 }
 0x526   :  { %944 = vrsqrt.f32 %v675_v41  ;;  %v676_v24 = vadd.f32 1e-05, %v672_v23 }
 0x528   :  { %946 = vrsqrt.f32 %v676_v24 }
 0x530   :  { %v945_v28 = vpop.eup %944 }
 0x531   :  { %v679_v0 = vmul.f32 %v945_v28, %v673_v27 }
 0x532   :  { %v947_v31 = vpop.eup %946 }
 0x533   :  { %v680_v32 = vmul.f32 %v947_v31, %v674_v29  ;;  %v685_v33 = vmul.f32 %v684_v26, %v679_v0 }
 0x535   :  { %v686_v34 = vmul.f32 %v684_v26, %v680_v32  ;;  %v691_v35 = vadd.f32 %v690_v30, %v685_v33 }
 0x537   :  { %v692_v36 = vadd.f32 %v690_v30, %v686_v34  ;;  %693 = vst [vmem:[#allocation10] sm:$0xff] %v691_v35 }
 0x539   :  { %694 = vst [vmem:[#allocation10 + $0x8] sm:$0xff] %v692_v36 }
 0x53a   :  { %1047 = shalt.err (!%p1044_p8)
}
 0x53b   :  { %s1048_s9 = scalar_lea.hbm %s1304_s6, 256 }
 0x53c   :  { %p1049_p9 = scmp.ne.s32.totalorder %s1304_s6, %s1048_s9  ;;  %p1052_p10 = scmp.lt.u32.totalorder %s1048_s9, %s1304_s6 }
 0x53e   :  { %p1054_p11 = pnand %p1052_p10, %p1049_p9 }
 0x540   :  { %1057 = shalt.err (!%p1054_p11)
}
 0x541   :  { %706 = dma.vmem_to_hbm [thread:$0]  %s701_s27, 256, %s1304_s6, [#allocation4], %s1070_s1, %s1070_s1, %s1071_s21  }
 0x542   :  { %1064 = dma.done.wait [#allocation4], 256  }
 0x543   :  { %1065 = vsyncadd [#allocation4], 4294967040 }
 0x544   :  { %710 = vsyncpa [#allocation3], 1 }
 0x545   :  { %711 = vsyncpa [#allocation6], 1 }
 0x546   :  { %712 = vsyncpa [#allocation9], 1 }
 0x547   :  { %713 = vsyncpa [#allocation4], 1 }

</bundles_post_ra>
